<compile_context>
chip_gen: v6e
topology: v6e:2x2x1
jax: 0.10.0
libtpu: 0.0.40
codegen_flags: <defaults>
</compile_context>

<pallas_src>
import functools

import jax
import jax.numpy as jnp
import numpy as np
from jax import lax
from jax.experimental import pallas as pl
from jax.experimental.pallas import tpu as pltpu

BN_EPS = 1e-5
LANE = 128            # feature dims zero-padded to the lane width
EDGE_TILE = 256       # edges per grid step
SENTINEL = -(2 ** 20)  # index padding: never matches any (non-negative) iota value


def _round_up(x, m):
    return (x + m - 1) // m * m


def ginconv_kernel(idx_ref, dst_ref, xw_ref, w1_ref, w2_ref, consts_ref, out_ref):
    """One grid step = one tile of TE edges accumulated into the resident out block.

    idx_ref    : [1, TE, 4] int32  per-edge columns into the fused contraction axis
                                   ([src, N+cat0, N+F0+cat1, unused]); SENTINEL pads
    dst_ref    : [1, 1, TE] int32  destination node per edge; SENTINEL pads
    xw_ref     : [Kp, Dp]   bf16   stacked [node_feats ; we0 ; we1] (zero row-padded)
    w1_ref     : [Dp, Hp]   f32    mlp Linear(emb, 2*emb) weight
    w2_ref     : [Hp, Dp]   f32    mlp Linear(2*emb, emb) weight
    consts_ref : [8, Cp]    f32    rows: 0 = be0+be1, 1 = b1, 2 = b2, 3 = gamma, 4 = beta
    out_ref    : [N, Dp]    f32    constant-index output block == the accumulator
    """
    f32 = jnp.float32
    bf16 = jnp.bfloat16
    k = pl.program_id(0)
    n_nodes, dp = out_ref.shape
    kp = xw_ref.shape[0]
    hp = w1_ref.shape[1]
    te = dst_ref.shape[-1]

    @pl.when(k == 0)
    def _init():
        out_ref[...] = jnp.zeros_like(out_ref)

    # Build the fused [TE, Kp] multi-hot (src one-hot | cat0 one-hot | cat1 one-hot)
    # in-register from the streamed int32 columns (no O(E*N) HBM traffic).
    ids = idx_ref[0]                                              # [TE, 4] int32
    col = lax.broadcasted_iota(jnp.int32, (te, kp), 1)
    hit = ((col == ids[:, 0:1]) | (col == ids[:, 1:2]) | (col == ids[:, 2:3]))
    lhs = jnp.where(hit, 1.0, 0.0).astype(bf16)                   # [TE, Kp], exact in bf16

    # Fused gather + edge embedding: x[src] + we0[cat0] + we1[cat1] + (be0 + be1).
    be = consts_ref[0:1, :dp]                                     # [1, Dp]
    msgs = jnp.dot(lhs, xw_ref[...], preferred_element_type=f32) + be    # [TE, Dp] f32

    # In-register dst one-hot (transposed).  Padded edges (SENTINEL) give an all-zero
    # column, so they contribute nothing even though their msgs carry the bias.
    dst_ids = dst_ref[0]                                          # [1, TE]
    row = lax.broadcasted_iota(jnp.int32, (n_nodes, te), 0)
    dst_oht = jnp.where(row == dst_ids, 1.0, 0.0).astype(bf16)    # [N, TE]

    # fn.sum by destination node: scatter-add as an MXU matmul, f32 accumulate directly
    # into the VMEM-resident output block (no separate scratch accumulator).
    out_ref[...] += jnp.dot(dst_oht, msgs.astype(bf16), preferred_element_type=f32)

    # Finalize on the last edge tile: node MLP + BatchNorm1d (training-mode batch stats).
    @pl.when(k == pl.num_programs(0) - 1)
    def _finalize():
        agg = out_ref[...]                                        # [N, Dp] f32
        b1 = consts_ref[1:2, :hp]
        b2 = consts_ref[2:3, :dp]
        gamma = consts_ref[3:4, :dp]
        beta = consts_ref[4:5, :dp]
        h = jnp.dot(agg, w1_ref[...], preferred_element_type=f32) + b1
        h = jnp.maximum(h, 0.0)
        y = jnp.dot(h, w2_ref[...], preferred_element_type=f32) + b2
        mean = jnp.mean(y, axis=0, keepdims=True)
        var = jnp.mean((y - mean) ** 2, axis=0, keepdims=True)    # biased var (BN default)
        y = (y - mean) * lax.rsqrt(var + BN_EPS) * gamma + beta
        # self.activation is None in the module default; nothing applied here.
        out_ref[...] = y.astype(out_ref.dtype)


@functools.partial(jax.jit, static_argnames=("edge_tile",))
def ginconv_forward(src, dst, node_feats, ef0, ef1,
                    we0, be0, we1, be1, w1, b1, w2, b2, gamma, beta,
                    *, edge_tile=EDGE_TILE):
    i32 = jnp.int32
    bf16 = jnp.bfloat16
    N, D = node_feats.shape
    E = src.shape[0]
    F0 = ef0.shape[1]
    F1 = ef1.shape[1]
    H = w1.shape[1]                       # 2 * D
    Dp = _round_up(D, LANE)
    Hp = _round_up(H, LANE)
    Cp = max(Dp, Hp)
    K = N + F0 + F1                       # fused contraction axis: [x ; we0 ; we1]
    Kp = _round_up(K, 8)
    TE = edge_tile
    Ep = _round_up(E, TE)
    n_tiles = Ep // TE

    # --- per-edge int32 index streams (16 + 4 bytes/edge instead of O(N) bytes/edge) ---
    # Categorical edge feats are one-hot rows (the module's Linear == embedding lookup),
    # so recover the category index and pre-offset it into the fused contraction axis.
    cat0 = jnp.argmax(ef0, axis=1).astype(i32)
    cat1 = jnp.argmax(ef1, axis=1).astype(i32)
    cols = jnp.stack([src.astype(i32),
                      N + cat0,
                      N + F0 + cat1,
                      jnp.zeros((E,), i32)], axis=1)                       # [E, 4]
    cols = jnp.pad(cols, ((0, Ep - E), (0, 0)), constant_values=SENTINEL)
    idx_e = cols.reshape(n_tiles, TE, 4)                                    # [n_tiles, TE, 4]

    dst_l = jnp.pad(dst.astype(i32), (0, Ep - E), constant_values=SENTINEL)
    dst_l = dst_l.reshape(n_tiles, 1, TE)                                   # [n_tiles, 1, TE]

    # --- fused, lane-padded resident operands (padded rows/cols stay exactly zero) ---
    x_p = jnp.pad(node_feats, ((0, 0), (0, Dp - D))).astype(bf16)           # [N, Dp]
    we_cat = jnp.concatenate([we0, we1], axis=0)                            # [F0+F1, D]
    we_p = jnp.pad(we_cat, ((0, 0), (0, Dp - D))).astype(bf16)              # [F0+F1, Dp]
    xw = jnp.concatenate([x_p, we_p], axis=0)                               # [K, Dp]
    xw = jnp.pad(xw, ((0, Kp - K), (0, 0)))                                 # [Kp, Dp] bf16

    be_p = jnp.pad(be0 + be1, ((0, 0), (0, Dp - D)))                        # [1, Dp]
    w1_p = jnp.pad(w1, ((0, Dp - D), (0, Hp - H)))                          # [Dp, Hp]
    b1_p = jnp.pad(b1, ((0, 0), (0, Hp - H)))                               # [1, Hp]
    w2_p = jnp.pad(w2, ((0, Hp - H), (0, Dp - D)))                          # [Hp, Dp]
    b2_p = jnp.pad(b2, ((0, 0), (0, Dp - D)))                               # [1, Dp]
    g_p = jnp.pad(gamma, ((0, 0), (0, Dp - D)))                             # [1, Dp]
    bt_p = jnp.pad(beta, ((0, 0), (0, Dp - D)))                             # [1, Dp]

    # Pack the five small row vectors into one resident (8, Cp) constants block.
    consts = jnp.zeros((8, Cp), jnp.float32)
    consts = consts.at[0, :Dp].set(be_p[0])
    consts = consts.at[1, :Hp].set(b1_p[0])
    consts = consts.at[2, :Dp].set(b2_p[0])
    consts = consts.at[3, :Dp].set(g_p[0])
    consts = consts.at[4, :Dp].set(bt_p[0])

    # --- BlockSpecs ---
    idx_spec = pl.BlockSpec((1, TE, 4), lambda k: (k, 0, 0))
    dst_spec = pl.BlockSpec((1, 1, TE), lambda k: (k, 0, 0))

    def resident(shape):
        return pl.BlockSpec(shape, lambda k, _nd=len(shape): (0,) * _nd)

    flops = (2 * Ep * Kp * Dp                 # fused gather + edge-embedding matmul
             + 2 * N * Ep * Dp                # scatter-add matmul
             + 2 * N * Dp * Hp + 2 * N * Hp * Dp)   # node MLP
    bytes_accessed = (idx_e.size * 4 + dst_l.size * 4
                      + xw.size * 2
                      + (w1_p.size + w2_p.size + consts.size) * 4
                      + N * Dp * 4)

    out = pl.pallas_call(
        ginconv_kernel,
        out_shape=jax.ShapeDtypeStruct((N, Dp), jnp.float32),
        grid_spec=pltpu.PrefetchScalarGridSpec(
            num_scalar_prefetch=0,
            grid=(n_tiles,),
            in_specs=[idx_spec, dst_spec,
                      resident((Kp, Dp)),
                      resident((Dp, Hp)),
                      resident((Hp, Dp)),
                      resident((8, Cp))],
            out_specs=pl.BlockSpec((N, Dp), lambda k: (0, 0)),
        ),
        compiler_params=pltpu.CompilerParams(
            dimension_semantics=("arbitrary",),   # the edge axis is a reduction
        ),
        cost_estimate=pl.CostEstimate(flops=flops, transcendentals=Dp,
                                      bytes_accessed=bytes_accessed),
    )(idx_e, dst_l, xw, w1_p, w2_p, consts)

    return out[:, :D]


def _linear_init(key, fan_in, fan_out):
    """Deterministic nn.Linear-style init, weight stored as [in, out]."""
    kw, kb = jax.random.split(key)
    bound = 1.0 / np.sqrt(fan_in)
    w = jax.random.uniform(kw, (fan_in, fan_out), jnp.float32, -bound, bound)
    b = jax.random.uniform(kb, (1, fan_out), jnp.float32, -bound, bound)
    return w, b


def reference_forward(src, dst, node_feats, ef0, ef1,
                      we0, be0, we1, be1, w1, b1, w2, b2, gamma, beta):
    N, D = node_feats.shape
    edge_emb = ef0 @ we0 + be0 + ef1 @ we1 + be1
    msgs = node_feats[src] + edge_emb
    agg = jnp.zeros((N, D), jnp.float32).at[dst].add(msgs)
    h = jnp.maximum(agg @ w1 + b1, 0.0)
    y = h @ w2 + b2
    mean = jnp.mean(y, axis=0, keepdims=True)
    var = jnp.mean((y - mean) ** 2, axis=0, keepdims=True)
    return (y - mean) * jax.lax.rsqrt(var + BN_EPS) * gamma + beta


if __name__ == "__main__":
    # Small deterministic problem: 16 nodes, 300 edges (padded to 512 -> 2 edge tiles so
    # the multi-tile accumulation path is exercised), emb_dim=32, num_edge_emb_list=[4, 3].
    N, E, D = 16, 300, 32
    F0, F1 = 4, 3

    key = jax.random.PRNGKey(0)
    keys = jax.random.split(key, 12)

    src = jax.random.randint(keys[0], (E,), 0, N)
    dst = jax.random.randint(keys[1], (E,), 0, N)
    cat0 = jax.random.randint(keys[2], (E,), 0, F0)
    cat1 = jax.random.randint(keys[3], (E,), 0, F1)

    ef0 = jax.nn.one_hot(cat0, F0, dtype=jnp.float32)      # [E, F0]
    ef1 = jax.nn.one_hot(cat1, F1, dtype=jnp.float32)      # [E, F1]
    node_feats = jax.random.normal(keys[4], (N, D), jnp.float32)

    we0, be0 = _linear_init(keys[5], F0, D)      # edge_embs[0]: Linear(F0, D)
    we1, be1 = _linear_init(keys[6], F1, D)      # edge_embs[1]: Linear(F1, D)
    w1, b1 = _linear_init(keys[7], D, 2 * D)     # mlp[0]: Linear(D, 2D)
    w2, b2 = _linear_init(keys[8], 2 * D, D)     # mlp[2]: Linear(2D, D)
    gamma = jnp.ones((1, D), jnp.float32)        # BatchNorm1d weight (reset: ones)
    beta = jnp.zeros((1, D), jnp.float32)        # BatchNorm1d bias   (reset: zeros)

    out = ginconv_forward(src, dst, node_feats, ef0, ef1,
                          we0, be0, we1, be1, w1, b1, w2, b2, gamma, beta)
    out = jax.block_until_ready(out)

    ref = reference_forward(src, dst, node_feats, ef0, ef1,
                            we0, be0, we1, be1, w1, b1, w2, b2, gamma, beta)
    # bf16 node-feature / message path (one-hots are exact in bf16); f32 accumulation.
    np.testing.assert_allclose(np.asarray(out), np.asarray(ref), atol=5e-2, rtol=5e-2)

    print("KERNEL_OK")
</pallas_src>

<mosaic_0001>
module attributes {stable_mosaic.version = 11 : i64} {
  func.func @ginconv_kernel(%arg0: i32, %arg1: memref<1x256x4xi32, #tpu.memory_space<vmem>>, %arg2: memref<1x1x256xi32, #tpu.memory_space<vmem>>, %arg3: memref<24x128xbf16, #tpu.memory_space<vmem>>, %arg4: memref<128x128xf32, #tpu.memory_space<vmem>>, %arg5: memref<128x128xf32, #tpu.memory_space<vmem>>, %arg6: memref<8x128xf32, #tpu.memory_space<vmem>>, %arg7: memref<16x128xf32, #tpu.memory_space<vmem>>) attributes {dimension_semantics = [#tpu.dimension_semantics<arbitrary>], iteration_bounds = array<i64: 2>, scalar_prefetch = 0 : i64, scratch_operands = 0 : i64, tpu.core_type = #tpu.core_type<tc>, window_params = [{transform_indices = @transform_0, window_bounds = array<i64: 1, 256, 4>}, {transform_indices = @transform_1, window_bounds = array<i64: 1, 1, 256>}, {pipeline_mode = #tpu.pipeline_mode<synchronous>, transform_indices = @transform_2, window_bounds = array<i64: 24, 128>}, {pipeline_mode = #tpu.pipeline_mode<synchronous>, transform_indices = @transform_3, window_bounds = array<i64: 128, 128>}, {pipeline_mode = #tpu.pipeline_mode<synchronous>, transform_indices = @transform_4, window_bounds = array<i64: 128, 128>}, {pipeline_mode = #tpu.pipeline_mode<synchronous>, transform_indices = @transform_5, window_bounds = array<i64: 8, 128>}, {pipeline_mode = #tpu.pipeline_mode<synchronous>, transform_indices = @transform_6, window_bounds = array<i64: 16, 128>}]} {
    %c0_i32 = arith.constant 0 : i32
    %0 = arith.cmpi eq, %arg0, %c0_i32 : i32
    %1 = arith.extui %0 : i1 to i32
    %c0_i32_0 = arith.constant 0 : i32
    %2 = arith.cmpi ne, %1, %c0_i32_0 : i32
    scf.if %2 {
      %cst_20 = arith.constant 0.000000e+00 : f32
      %43 = vector.broadcast %cst_20 : f32 to vector<16x128xf32>
      %c0_21 = arith.constant 0 : index
      %c0_22 = arith.constant 0 : index
      %44 = vector.load %arg7[%c0_21, %c0_22] : memref<16x128xf32, #tpu.memory_space<vmem>>, vector<16x128xf32>
      tpu.vector_store %arg7[%c0_21, %c0_22], %43 {strides = array<i32>} : memref<16x128xf32, #tpu.memory_space<vmem>>, vector<16x128xf32>,
    } else {
    }
    %c0 = arith.constant 0 : index
    %c0_1 = arith.constant 0 : index
    %c0_2 = arith.constant 0 : index
    %3 = vector.load %arg1[%c0, %c0_1, %c0_2] : memref<1x256x4xi32, #tpu.memory_space<vmem>>, vector<1x256x4xi32>
    %4 = vector.shape_cast %3 : vector<1x256x4xi32> to vector<256x4xi32>
    %5 = tpu.iota {dimensions = array<i32: 1>} : vector<256x24xi32>
    %6 = vector.extract_strided_slice %4 {offsets = [0, 0], sizes = [256, 1], strides = [1, 1]} : vector<256x4xi32> to vector<256x1xi32>
    %7 = vector.broadcast %6 : vector<256x1xi32> to vector<256x24xi32>
    %8 = arith.cmpi eq, %5, %7 : vector<256x24xi32>
    %9 = vector.extract_strided_slice %4 {offsets = [0, 1], sizes = [256, 1], strides = [1, 1]} : vector<256x4xi32> to vector<256x1xi32>
    %10 = vector.broadcast %9 : vector<256x1xi32> to vector<256x24xi32>
    %11 = arith.cmpi eq, %5, %10 : vector<256x24xi32>
    %12 = arith.ori %8, %11 : vector<256x24xi1>
    %13 = vector.extract_strided_slice %4 {offsets = [0, 2], sizes = [256, 1], strides = [1, 1]} : vector<256x4xi32> to vector<256x1xi32>
    %14 = vector.broadcast %13 : vector<256x1xi32> to vector<256x24xi32>
    %15 = arith.cmpi eq, %5, %14 : vector<256x24xi32>
    %16 = arith.ori %12, %15 : vector<256x24xi1>
    %cst = arith.constant 1.000000e+00 : f32
    %cst_3 = arith.constant 0.000000e+00 : f32
    %17 = vector.broadcast %cst : f32 to vector<256x24xf32>
    %18 = vector.broadcast %cst_3 : f32 to vector<256x24xf32>
    %19 = arith.select %16, %17, %18 : vector<256x24xi1>, vector<256x24xf32>
    %20 = arith.truncf %19 : vector<256x24xf32> to vector<256x24xbf16>
    %c0_4 = arith.constant 0 : index
    %c0_5 = arith.constant 0 : index
    %21 = vector.load %arg6[%c0_4, %c0_5] : memref<8x128xf32, #tpu.memory_space<vmem>>, vector<1x128xf32>
    %c0_6 = arith.constant 0 : index
    %c0_7 = arith.constant 0 : index
    %22 = vector.load %arg3[%c0_6, %c0_7] : memref<24x128xbf16, #tpu.memory_space<vmem>>, vector<24x128xbf16>
    %cst_8 = arith.constant dense<0.000000e+00> : vector<256x128xf32>
    %23 = tpu.matmul %20, %22, %cst_8 {dimension_numbers = #tpu.dot_dimension_numbers<[1], [0], [0], [1], [0, 0, 1, 1], [], []>} : vector<256x24xbf16>, vector<24x128xbf16>, vector<256x128xf32> -> vector<256x128xf32>
    %24 = vector.broadcast %21 : vector<1x128xf32> to vector<256x128xf32>
    %25 = arith.addf %23, %24 : vector<256x128xf32>
    %c0_9 = arith.constant 0 : index
    %c0_10 = arith.constant 0 : index
    %c0_11 = arith.constant 0 : index
    %26 = vector.load %arg2[%c0_9, %c0_10, %c0_11] : memref<1x1x256xi32, #tpu.memory_space<vmem>>, vector<1x1x256xi32>
    %27 = vector.shape_cast %26 : vector<1x1x256xi32> to vector<1x256xi32>
    %28 = tpu.iota {dimensions = array<i32: 0>} : vector<16x256xi32>
    %29 = vector.broadcast %27 : vector<1x256xi32> to vector<16x256xi32>
    %30 = arith.cmpi eq, %28, %29 : vector<16x256xi32>
    %cst_12 = arith.constant 1.000000e+00 : f32
    %cst_13 = arith.constant 0.000000e+00 : f32
    %31 = vector.broadcast %cst_12 : f32 to vector<16x256xf32>
    %32 = vector.broadcast %cst_13 : f32 to vector<16x256xf32>
    %33 = arith.select %30, %31, %32 : vector<16x256xi1>, vector<16x256xf32>
    %34 = arith.truncf %33 : vector<16x256xf32> to vector<16x256xbf16>
    %c0_14 = arith.constant 0 : index
    %c0_15 = arith.constant 0 : index
    %35 = vector.load %arg7[%c0_14, %c0_15] : memref<16x128xf32, #tpu.memory_space<vmem>>, vector<16x128xf32>
    %36 = arith.truncf %25 : vector<256x128xf32> to vector<256x128xbf16>
    %cst_16 = arith.constant dense<0.000000e+00> : vector<16x128xf32>
    %37 = tpu.matmul %34, %36, %cst_16 {dimension_numbers = #tpu.dot_dimension_numbers<[1], [0], [0], [1], [0, 0, 1, 1], [], []>} : vector<16x256xbf16>, vector<256x128xbf16>, vector<16x128xf32> -> vector<16x128xf32>
    %38 = arith.addf %35, %37 : vector<16x128xf32>
    %c0_17 = arith.constant 0 : index
    %c0_18 = arith.constant 0 : index
    %39 = vector.load %arg7[%c0_17, %c0_18] : memref<16x128xf32, #tpu.memory_space<vmem>>, vector<16x128xf32>
    tpu.vector_store %arg7[%c0_17, %c0_18], %38 {strides = array<i32>} : memref<16x128xf32, #tpu.memory_space<vmem>>, vector<16x128xf32>,
    %c1_i32 = arith.constant 1 : i32
    %40 = arith.cmpi eq, %arg0, %c1_i32 : i32
    %41 = arith.extui %40 : i1 to i32
    %c0_i32_19 = arith.constant 0 : i32
    %42 = arith.cmpi ne, %41, %c0_i32_19 : i32
    scf.if %42 {
      %c0_20 = arith.constant 0 : index
      %c0_21 = arith.constant 0 : index
      %43 = vector.load %arg7[%c0_20, %c0_21] : memref<16x128xf32, #tpu.memory_space<vmem>>, vector<16x128xf32>
      %c1 = arith.constant 1 : index
      %c0_22 = arith.constant 0 : index
      %44 = vector.load %arg6[%c1, %c0_22] : memref<8x128xf32, #tpu.memory_space<vmem>>, vector<1x128xf32>
      %c2 = arith.constant 2 : index
      %c0_23 = arith.constant 0 : index
      %45 = vector.load %arg6[%c2, %c0_23] : memref<8x128xf32, #tpu.memory_space<vmem>>, vector<1x128xf32>
      %c3 = arith.constant 3 : index
      %c0_24 = arith.constant 0 : index
      %46 = vector.load %arg6[%c3, %c0_24] : memref<8x128xf32, #tpu.memory_space<vmem>>, vector<1x128xf32>
      %c4 = arith.constant 4 : index
      %c0_25 = arith.constant 0 : index
      %47 = vector.load %arg6[%c4, %c0_25] : memref<8x128xf32, #tpu.memory_space<vmem>>, vector<1x128xf32>
      %c0_26 = arith.constant 0 : index
      %c0_27 = arith.constant 0 : index
      %48 = vector.load %arg4[%c0_26, %c0_27] : memref<128x128xf32, #tpu.memory_space<vmem>>, vector<128x128xf32>
      %cst_28 = arith.constant dense<0.000000e+00> : vector<16x128xf32>
      %49 = tpu.matmul %43, %48, %cst_28 {dimension_numbers = #tpu.dot_dimension_numbers<[1], [0], [0], [1], [0, 0, 1, 1], [], []>} : vector<16x128xf32>, vector<128x128xf32>, vector<16x128xf32> -> vector<16x128xf32>
      %50 = vector.broadcast %44 : vector<1x128xf32> to vector<16x128xf32>
      %51 = arith.addf %49, %50 : vector<16x128xf32>
      %cst_29 = arith.constant 0.000000e+00 : f32
      %52 = vector.broadcast %cst_29 : f32 to vector<16x128xf32>
      %53 = arith.maximumf %51, %52 : vector<16x128xf32>
      %c0_30 = arith.constant 0 : index
      %c0_31 = arith.constant 0 : index
      %54 = vector.load %arg5[%c0_30, %c0_31] : memref<128x128xf32, #tpu.memory_space<vmem>>, vector<128x128xf32>
      %cst_32 = arith.constant dense<0.000000e+00> : vector<16x128xf32>
      %55 = tpu.matmul %53, %54, %cst_32 {dimension_numbers = #tpu.dot_dimension_numbers<[1], [0], [0], [1], [0, 0, 1, 1], [], []>} : vector<16x128xf32>, vector<128x128xf32>, vector<16x128xf32> -> vector<16x128xf32>
      %56 = vector.broadcast %45 : vector<1x128xf32> to vector<16x128xf32>
      %57 = arith.addf %55, %56 : vector<16x128xf32>
      %cst_33 = arith.constant dense<0.000000e+00> : vector<128xf32>
      %58 = vector.multi_reduction <add>, %57, %cst_33 [0] : vector<16x128xf32> to vector<128xf32>
      %59 = vector.shape_cast %58 : vector<128xf32> to vector<1x128xf32>
      %cst_34 = arith.constant 1.600000e+01 : f32
      %60 = vector.broadcast %cst_34 : f32 to vector<1x128xf32>
      %61 = arith.divf %59, %60 : vector<1x128xf32>
      %62 = vector.broadcast %61 : vector<1x128xf32> to vector<16x128xf32>
      %63 = arith.subf %57, %62 : vector<16x128xf32>
      %64 = arith.mulf %63, %63 : vector<16x128xf32>
      %cst_35 = arith.constant dense<0.000000e+00> : vector<128xf32>
      %65 = vector.multi_reduction <add>, %64, %cst_35 [0] : vector<16x128xf32> to vector<128xf32>
      %66 = vector.shape_cast %65 : vector<128xf32> to vector<1x128xf32>
      %cst_36 = arith.constant 1.600000e+01 : f32
      %67 = vector.broadcast %cst_36 : f32 to vector<1x128xf32>
      %68 = arith.divf %66, %67 : vector<1x128xf32>
      %69 = vector.broadcast %61 : vector<1x128xf32> to vector<16x128xf32>
      %70 = arith.subf %57, %69 : vector<16x128xf32>
      %cst_37 = arith.constant 9.99999974E-6 : f32
      %71 = vector.broadcast %cst_37 : f32 to vector<1x128xf32>
      %72 = arith.addf %68, %71 : vector<1x128xf32>
      %73 = math.rsqrt %72 : vector<1x128xf32>
      %74 = vector.broadcast %73 : vector<1x128xf32> to vector<16x128xf32>
      %75 = arith.mulf %70, %74 : vector<16x128xf32>
      %76 = vector.broadcast %46 : vector<1x128xf32> to vector<16x128xf32>
      %77 = arith.mulf %75, %76 : vector<16x128xf32>
      %78 = vector.broadcast %47 : vector<1x128xf32> to vector<16x128xf32>
      %79 = arith.addf %77, %78 : vector<16x128xf32>
      %c0_38 = arith.constant 0 : index
      %c0_39 = arith.constant 0 : index
      %80 = vector.load %arg7[%c0_38, %c0_39] : memref<16x128xf32, #tpu.memory_space<vmem>>, vector<16x128xf32>
      tpu.vector_store %arg7[%c0_38, %c0_39], %79 {strides = array<i32>} : memref<16x128xf32, #tpu.memory_space<vmem>>, vector<16x128xf32>,
    } else {
    }
    return
  }
  func.func @transform_0(%arg0: i32) -> (i32, i32, i32) {
    %c0_i32 = arith.constant 0 : i32
    %c0_i32_0 = arith.constant 0 : i32
    %c0_i32_1 = arith.constant 0 : i32
    return %arg0, %c0_i32, %c0_i32_0 : i32, i32, i32
  }
  func.func @transform_1(%arg0: i32) -> (i32, i32, i32) {
    %c0_i32 = arith.constant 0 : i32
    %c0_i32_0 = arith.constant 0 : i32
    %c0_i32_1 = arith.constant 0 : i32
    return %arg0, %c0_i32, %c0_i32_0 : i32, i32, i32
  }
  func.func @transform_2(%arg0: i32) -> (i32, i32) {
    %c0_i32 = arith.constant 0 : i32
    %c0_i32_0 = arith.constant 0 : i32
    %c0_i32_1 = arith.constant 0 : i32
    return %c0_i32, %c0_i32_0 : i32, i32
  }
  func.func @transform_3(%arg0: i32) -> (i32, i32) {
    %c0_i32 = arith.constant 0 : i32
    %c0_i32_0 = arith.constant 0 : i32
    %c0_i32_1 = arith.constant 0 : i32
    return %c0_i32, %c0_i32_0 : i32, i32
  }
  func.func @transform_4(%arg0: i32) -> (i32, i32) {
    %c0_i32 = arith.constant 0 : i32
    %c0_i32_0 = arith.constant 0 : i32
    %c0_i32_1 = arith.constant 0 : i32
    return %c0_i32, %c0_i32_0 : i32, i32
  }
  func.func @transform_5(%arg0: i32) -> (i32, i32) {
    %c0_i32 = arith.constant 0 : i32
    %c0_i32_0 = arith.constant 0 : i32
    %c0_i32_1 = arith.constant 0 : i32
    return %c0_i32, %c0_i32_0 : i32, i32
  }
  func.func @transform_6(%arg0: i32) -> (i32, i32) {
    %c0_i32 = arith.constant 0 : i32
    %c0_i32_0 = arith.constant 0 : i32
    %c0_i32_1 = arith.constant 0 : i32
    return %c0_i32, %c0_i32_0 : i32, i32
  }
}

</mosaic_0001>

<bundles_post_ra>
// kernel: ginconv_forward.1
= control target key start
LH: loop header
LB: loop body
LE: loop exit
PB: predicated region body
PF: predicated region fallthrough
CT: control target
= control target key end

     0   :  { %11 = vsyncpa [#allocation3], 0  ;;  %s1784_s21 = smov 0   ;;  %s2426_s0 = inlined_call_operand.vmem [shape: s32[2,256,4], index: 0, kind: input, shape index: {}]   ;;  %s2427_s1 = inlined_call_operand.vmem [shape: s32[2,1,256], index: 1, kind: input, shape index: {}]   ;;  %s2428_s2 = inlined_call_operand.vmem [shape: bf16[24,128], index: 2, kind: input, shape index: {}]   ;;  %s2429_s3 = inlined_call_operand.vmem [shape: f32[128,128], index: 3, kind: input, shape index: {}]   ;;  %s2430_s4 = inlined_call_operand.vmem [shape: f32[128,128], index: 4, kind: input, shape index: {}]   ;;  %s2431_s5 = inlined_call_operand.vmem [shape: f32[8,128], index: 5, kind: input, shape index: {}]   ;;  %s2432_s6 = inlined_call_operand.hbm [shape: f32[16,128], index: 6, kind: output, shape index: {}]  }
   0x1 LB: > { %s1790_s22 = sadd.s32 4294967295, %s1738_s21   ;;  %p1412_p0 = scmp.ge.s32.totalorder %s1738_s21, 1  ;;  %s1738_s21 = sphi %s1784_s21, %s17_s21  }
   0x2   : > { %p217_p1 = scmp.lt.s32.totalorder %s1738_s21, 3 }
   0x4   : > { %p218_p2 = pnand %p1412_p0, %p217_p1 }
   0x5   : > { %p246_p3 = scmp.lt.s32.totalorder (!%p218_p2), %s1790_s22, 1  ;;  %p1416_p4 = scmp.ne.s32.totalorder (!%p218_p2), %s1790_s22, 0 }
   0x6   : > { %221 = sbr.rel (%p218_p2) target bundleno = 1362 (0x552), region = 44 }
   0xb   : > { %s247_s23 = scalar_select %p246_p3, %s1790_s22, 1 }
   0xc   : > { %259 = sbr.rel (%p1416_p4) target bundleno = 19 (0x13), region = 48 }
   0xd   : > { %s1449_s24 = sshll.u32 %s247_s23, 8  ;;  %s1415_s25 = sshll.u32 %s247_s23, 1 }
   0xe   : > { %s1799_s28 = scalar_lea.vmem %s2426_s0, %s1449_s24  ;;  %s1804_s7 = scalar_lea.vmem %s2427_s1, %s1415_s25 }
  0x11   : > { %v1740_v0 = vmov 0.0  }
  0x12   : > { %260 = vst [vmem:[#allocation2] sm:$0xff] %v1740_v0  ;;  %261 = vst [vmem:[#allocation2 + $0x8] sm:$0xff] %v1740_v0 }
  0x13 PF: > { %v1808_v1 = vld [vmem:[%s1799_s28 + $0x10] sm:$0xff]  ;;  %v262_v2 = vld [vmem:[%s1799_s28] sm:$0xff]  ;;  %v1741_v3 = vmov 1   ;;  %v267_v4 = vld [vmem:[%s1799_s28 + $0x28] sm:$0xff]  ;;  %v1742_v8 = vmov 0   ;;  %v1743_v9 = vmov 2   ;;  %v294_v59 = vlaneseq }
  0x14   : > { %1658 = vset.pattern.permute.xlu0 %v1741_v3  ;;  %1656 = vset.pattern.permute.xlu1 %v1741_v3  ;;  %v263_v5 = vld [vmem:[%s1799_s28 + $0x8] sm:$0xff]  ;;  %v268_v6 = vld [vmem:[%s1799_s28 + $0x30] sm:$0xff]  ;;  %v265_v7 = vld [vmem:[%s1799_s28 + $0x18] sm:$0xff]  ;;  %vm858_vm0 = vcmask 1043456   ;;  %p1440_p5 = scmp.ne.s32.totalorder %s1790_s22, 1 }
  0x15   : > { %431 = vperm.xlu0 %1658, %v1808_v1   ;;  %425 = vperm.xlu1 %1656, %v262_v2   ;;  %v266_v10 = vld [vmem:[%s1799_s28 + $0x20] sm:$0xff]  ;;  %v269_v11 = vld [vmem:[%s1799_s28 + $0x38] sm:$0xff]  ;;  %v271_v12 = vld [vmem:[%s1799_s28 + $0x48] sm:$0xff]  ;;  %v1968_v62 = vand.u32 127, %v294_v59 }
  0x16   : > { %v1827_v13 = vld [vmem:[%s1799_s28 + $0x60] sm:$0xff]  ;;  %v1831_v14 = vld [vmem:[%s1799_s28 + $0x78] sm:$0xff]  ;;  %v1836_v15 = vld [vmem:[%s1799_s28 + $0x88] sm:$0xff] }
  0x17   : > { %v1841_v16 = vld [vmem:[%s1799_s28 + $0xa0] sm:$0xff]  ;;  %v1846_v17 = vld [vmem:[%s1799_s28 + $0xb8] sm:$0xff]  ;;  %v1850_v18 = vld [vmem:[%s1799_s28 + $0xc8] sm:$0xff] }
  0x18   : > { %v1700_v19 = vld [vmem:[%s2428_s2 + $0x8] ss:$0 sps:$4 sm:$0xff]   ;;  %v1701_v21 = vld [vmem:[%s2428_s2] sm:$0xff]   ;;  %v272_v23 = vld [vmem:[%s1799_s28 + $0x50] sm:$0xff] }
  0x19   : > { %440 = vperm.xlu0 %1658, %v267_v4   ;;  %428 = vperm.xlu1 %1656, %v263_v5   ;;  %v860_v20 = vsel %vm858_vm0, %v1700_v19, 0  ;;  %v270_v22 = vld [vmem:[%s1799_s28 + $0x40] sm:$0xff]  ;;  %v273_v24 = vld [vmem:[%s1799_s28 + $0x58] sm:$0xff]  ;;  %v1873_v25 = vld [vmem:[%s1799_s28 + $0x90] sm:$0xff] }
  0x1a   : > { %1632 = vmatprep.subr.msk.bf16.mxu0 %vm858_vm0, %v1700_v19  ;;  %v1880_v26 = vld [vmem:[%s1799_s28 + $0xd0] sm:$0xff]  ;;  %v1884_v27 = vld [vmem:[%s1799_s28 + $0xe0] sm:$0xff]  ;;  %v275_v28 = vld [vmem:[%s1799_s28 + $0x68] sm:$0xff] }
  0x1b   : > { %1527 = vmatpush3.bf16.msra.mxu0 %v860_v20  ;;  %v276_v29 = vld [vmem:[%s1799_s28 + $0x70] sm:$0xff]  ;;  %v1898_v30 = vld [vmem:[%s1799_s28 + $0xa8] sm:$0xff]  ;;  %v278_v38 = vld [vmem:[%s1799_s28 + $0x80] sm:$0xff] }
  0x1c   : > { %1528 = vmatprep.subr.bf16.mxu0 %v1701_v21  ;;  %v1907_v33 = vld [vmem:[%s1799_s28 + $0xb0] sm:$0xff]  ;;  %v1920_v39 = vld [vmem:[%s1799_s28 + $0xe8] sm:$0xff]  ;;  %v281_v47 = vld [vmem:[%s1799_s28 + $0x98] sm:$0xff] }
  0x1d   : > { %443 = vperm.xlu0 %1658, %v268_v6   ;;  %1657 = vset.pattern.permute.xlu1 %v1742_v8  ;;  %v1927_v41 = vld [vmem:[%s1799_s28 + $0xf0] sm:$0xff]  ;;  %v1942_v48 = vld [vmem:[%s1799_s28 + $0xf8] sm:$0xff] }
  0x1e   : > { %306 = vperm.xlu1 %1657, %v265_v7  }
  0x1f   : > { %1529 = vmatpush3.bf16.msra.mxu0 %v1701_v21 }
  0x21   : > { %1664 = vset.pattern.permute.xlu0 %v1743_v9 }
  0x22   : > { %588 = vperm.xlu0 %1664, %v263_v5   ;;  %1659 = vset.pattern.permute.xlu1 %v1741_v3 }
  0x23   : > { %434 = vperm.xlu1 %1659, %v265_v7  }
  0x26   : > { %597 = vperm.xlu0 %1664, %v266_v10  }
  0x27   : > { %1660 = vset.pattern.permute.xlu1 %v1743_v9 }
  0x28   : > { %585 = vperm.xlu1 %1660, %v262_v2  }
  0x2a   : > { %606 = vperm.xlu0 %1664, %v269_v11  }
  0x2c   : > { %591 = vperm.xlu1 %1660, %v1808_v1  }
  0x2e   : > { %612 = vperm.xlu0 %1664, %v271_v12  }
  0x30   : > { %594 = vperm.xlu1 %1660, %v265_v7  }
  0x32   : > { %621 = vperm.xlu0 %1664, %v1827_v13  }
  0x34   : > { %1661 = vset.pattern.permute.xlu1 %v1742_v8 }
  0x35   : > { %312 = vperm.xlu1 %1661, %v267_v4  }
  0x36   : > { %630 = vperm.xlu0 %1664, %v1831_v14  }
  0x39   : > { %1662 = vset.pattern.permute.xlu1 %v1741_v3 }
  0x3a   : > { %636 = vperm.xlu0 %1664, %v1836_v15   ;;  %437 = vperm.xlu1 %1662, %v266_v10  }
  0x3e   : > { %645 = vperm.xlu0 %1664, %v1841_v16   ;;  %1663 = vset.pattern.permute.xlu1 %v1742_v8 }
  0x3f   : > { %315 = vperm.xlu1 %1663, %v268_v6  }
  0x42   : > { %654 = vperm.xlu0 %1664, %v1846_v17  }
  0x43   : > { %318 = vperm.xlu1 %1663, %v269_v11  }
  0x46   : > { %660 = vperm.xlu0 %1664, %v1850_v18  }
  0x47   : > { %1665 = vset.pattern.permute.xlu1 %v1741_v3 }
  0x48   : > { %446 = vperm.xlu1 %1665, %v269_v11   ;;  %v1744_v11 = vmov 0.0  }
  0x4a   : > { %1692 = vset.pattern.permute.xlu0 %v1742_v8 }
  0x4b   : > { %297 = vperm.xlu0 %1692, %v262_v2  }
  0x4c   : > { %1666 = vset.pattern.permute.xlu1 %v1743_v9 }
  0x4d   : > { %600 = vperm.xlu1 %1666, %v267_v4  }
  0x4f   : > { %300 = vperm.xlu0 %1692, %v263_v5  }
  0x51   : > { %603 = vperm.xlu1 %1666, %v268_v6  }
  0x53   : > { %303 = vperm.xlu0 %1692, %v1808_v1  }
  0x55   : > { %1667 = vset.pattern.permute.xlu1 %v1742_v8 }
  0x56   : > { %321 = vperm.xlu1 %1667, %v270_v22  }
  0x57   : > { %309 = vperm.xlu0 %1692, %v266_v10  }
  0x5a   : > { %1668 = vset.pattern.permute.xlu1 %v1741_v3 }
  0x5b   : > { %324 = vperm.xlu0 %1692, %v271_v12   ;;  %449 = vperm.xlu1 %1668, %v270_v22  }
  0x5f   : > { %327 = vperm.xlu0 %1692, %v272_v23   ;;  %452 = vperm.xlu1 %1668, %v271_v12  }
  0x63   : > { %333 = vperm.xlu0 %1692, %v1827_v13   ;;  %1669 = vset.pattern.permute.xlu1 %v1742_v8 }
  0x64   : > { %330 = vperm.xlu1 %1669, %v273_v24  }
  0x67   : > { %348 = vperm.xlu0 %1692, %v1836_v15  }
  0x68   : > { %1670 = vset.pattern.permute.xlu1 %v1741_v3 }
  0x69   : > { %458 = vperm.xlu1 %1670, %v273_v24  }
  0x6b   : > { %351 = vperm.xlu0 %1692, %v1873_v25  }
  0x6d   : > { %1671 = vset.pattern.permute.xlu1 %v1743_v9 }
  0x6e   : > { %609 = vperm.xlu1 %1671, %v270_v22  }
  0x6f   : > { %357 = vperm.xlu0 %1692, %v1841_v16  }
  0x72   : > { %615 = vperm.xlu1 %1671, %v272_v23  }
  0x73   : > { %372 = vperm.xlu0 %1692, %v1850_v18  }
  0x76   : > { %618 = vperm.xlu1 %1671, %v273_v24  }
  0x77   : > { %375 = vperm.xlu0 %1692, %v1880_v26  }
  0x7a   : > { %1672 = vset.pattern.permute.xlu1 %v1742_v8 }
  0x7b   : > { %381 = vperm.xlu0 %1692, %v1884_v27   ;;  %336 = vperm.xlu1 %1672, %v275_v28  }
  0x7f   : > { %1693 = vset.pattern.permute.xlu0 %v1741_v3  ;;  %1673 = vset.pattern.permute.xlu1 %v1741_v3 }
  0x80   : > { %455 = vperm.xlu0 %1693, %v272_v23   ;;  %461 = vperm.xlu1 %1673, %v1827_v13  }
  0x84   : > { %464 = vperm.xlu0 %1693, %v275_v28   ;;  %1674 = vset.pattern.permute.xlu1 %v1742_v8 }
  0x85   : > { %339 = vperm.xlu1 %1674, %v276_v29  }
  0x88   : > { %467 = vperm.xlu0 %1693, %v276_v29  }
  0x89   : > { %342 = vperm.xlu1 %1674, %v1831_v14  }
  0x8c   : > { %479 = vperm.xlu0 %1693, %v1873_v25  }
  0x8d   : > { %1675 = vset.pattern.permute.xlu1 %v1741_v3 }
  0x8e   : > { %470 = vperm.xlu1 %1675, %v1831_v14  }
  0x90   : > { %v1901_v31 = vpop.permute.xlu1 %425  ;;  %v1903_v32 = vpop.permute.xlu0 %431  ;;  %488 = vperm.xlu0 %1693, %v1898_v30  }
  0x91   : > { %vm520_vm4 = vcmp.eq.s32.totalorder %v1968_v62, %v1901_v31 }
  0x92   : > { %1676 = vset.pattern.permute.xlu1 %v1743_v9 }
  0x93   : > { %624 = vperm.xlu1 %1676, %v275_v28  }
  0x94   : > { %v1910_v34 = vpop.permute.xlu1 %428  ;;  %v1912_v35 = vpop.permute.xlu0 %440  ;;  %491 = vperm.xlu0 %1693, %v1907_v33  }
  0x95   : > { %vm525_vm5 = vcmp.eq.s32.totalorder %v1968_v62, %v1912_v35  ;;  %vm521_vm14 = vcmp.eq.s32.totalorder %v1968_v62, %v1910_v34 }
  0x97   : > { %627 = vperm.xlu1 %1676, %v276_v29  }
  0x98   : > { %v1915_v36 = vpop.permute.xlu0 %443  ;;  %503 = vperm.xlu0 %1693, %v1880_v26  }
  0x99   : > { %v307_v37 = vpop.permute.xlu1 %306  ;;  %vm526_vm15 = vcmp.eq.s32.totalorder %v1968_v62, %v1915_v36 }
  0x9a   : > { %vm395_vm2 = vcmp.eq.s32.totalorder %v1968_v62, %v307_v37 }
  0x9b   : > { %1677 = vset.pattern.permute.xlu1 %v1742_v8 }
  0x9c   : > { %345 = vperm.xlu1 %1677, %v278_v38   ;;  %512 = vperm.xlu0 %1693, %v1920_v39  }
  0x9d   : > { %v1924_v40 = vpop.permute.xlu0 %588 }
  0x9e   : > { %v435_v42 = vpop.permute.xlu1 %434  ;;  %vm681_vm11 = vcmp.eq.s32.totalorder %v1968_v62, %v1924_v40 }
  0x9f   : > { %vm523_vm1 = vcmp.eq.s32.totalorder %v1968_v62, %v435_v42 }
  0xa0   : > { %1678 = vset.pattern.permute.xlu1 %v1741_v3  ;;  %515 = vperm.xlu0 %1693, %v1927_v41   ;;  %vm555_vm6 = vmor %vm395_vm2, %vm523_vm1 }
  0xa1   : > { %473 = vperm.xlu1 %1678, %v278_v38   ;;  %v1931_v43 = vpop.permute.xlu0 %597 }
  0xa3   : > { %v586_v44 = vpop.permute.xlu1 %585 }
  0xa4   : > { %1698 = vset.pattern.permute.xlu0 %v1743_v9  ;;  %vm680_vm12 = vcmp.eq.s32.totalorder %v1968_v62, %v586_v44 }
  0xa5   : > { %476 = vperm.xlu1 %1678, %v1836_v15   ;;  %v1935_v45 = vpop.permute.xlu0 %606  ;;  %669 = vperm.xlu0 %1698, %v1884_v27  }
  0xa7   : > { %v1938_v46 = vpop.permute.xlu1 %591 }
  0xa9   : > { %1679 = vset.pattern.permute.xlu1 %v1742_v8  ;;  %v1945_v49 = vpop.permute.xlu0 %612  ;;  %678 = vperm.xlu0 %1698, %v1942_v48  }
  0xaa   : > { %354 = vperm.xlu1 %1679, %v281_v47  }
  0xab   : > { %v595_v50 = vpop.permute.xlu1 %594 }
  0xac   : > { %vm683_vm3 = vcmp.eq.s32.totalorder %v1968_v62, %v595_v50 }
  0xad   : > { %v1948_v51 = vpop.permute.xlu0 %621  ;;  %vm1981_vm10 = vmor %vm555_vm6, %vm683_vm3 }
  0xae   : > { %1680 = vset.pattern.permute.xlu1 %v1741_v3  ;;  %v747_v19 = vsel %vm1981_vm10, 1.0, %v1744_v11  ;;  %vm687_vm10 = vcmp.eq.s32.totalorder %v1968_v62, %v1935_v45 }
  0xaf   : > { %482 = vperm.xlu1 %1680, %v281_v47  }
  0xb0   : > { %v313_v52 = vpop.permute.xlu1 %312 }
  0xb1   : > { %v1951_v53 = vpop.permute.xlu0 %630  ;;  %vm397_vm7 = vcmp.eq.s32.totalorder %v1968_v62, %v313_v52 }
  0xb2   : > { %vm1988_vm13 = vmor %vm397_vm7, %vm525_vm5  ;;  %vm522_vm5 = vcmp.eq.s32.totalorder %v1968_v62, %v1903_v32 }
  0xb3   : > { %1681 = vset.pattern.permute.xlu1 %v1743_v9 }
  0xb4   : > { %633 = vperm.xlu1 %1681, %v278_v38   ;;  %v286_v38 = vld [vmem:[%s1799_s28 + $0xc0] sm:$0xff] }
  0xb5   : > { %v1954_v54 = vpop.permute.xlu1 %437  ;;  %v1956_v55 = vpop.permute.xlu0 %636 }
  0xb8   : > { %639 = vperm.xlu1 %1681, %v1873_v25  }
  0xb9   : > { %v1959_v56 = vpop.permute.xlu0 %645 }
  0xba   : > { %v316_v57 = vpop.permute.xlu1 %315 }
  0xbb   : > { %vm398_vm0 = vcmp.eq.s32.totalorder %v1968_v62, %v316_v57 }
  0xbc   : > { %642 = vperm.xlu1 %1681, %v281_v47  }
  0xbd   : > { %v1961_v58 = vpop.permute.xlu0 %654 }
  0xbe   : > { %v319_v60 = vpop.permute.xlu1 %318 }
  0xbf   : > { %vm399_vm7 = vcmp.eq.s32.totalorder %v1968_v62, %v319_v60 }
  0xc0   : > { %1682 = vset.pattern.permute.xlu1 %v1742_v8 }
  0xc1   : > { %360 = vperm.xlu1 %1682, %v1898_v30   ;;  %v1965_v61 = vpop.permute.xlu0 %660 }
  0xc3   : > { %v447_v63 = vpop.permute.xlu1 %446 }
  0xc4   : > { %vm527_vm3 = vcmp.eq.s32.totalorder %v1968_v62, %v447_v63 }
  0xc5   : > { %1683 = vset.pattern.permute.xlu1 %v1741_v3 }
  0xc6   : > { %v298_v0 = vpop.permute.xlu0 %297  ;;  %485 = vperm.xlu1 %1683, %v1841_v16  }
  0xc7   : > { %vm392_vm8 = vcmp.eq.s32.totalorder %v1968_v62, %v298_v0 }
  0xc8   : > { %vm552_vm9 = vmor %vm392_vm8, %vm520_vm4  ;;  %v601_v1 = vpop.permute.xlu1 %600 }
  0xc9   : > { %vm712_vm1 = vmor %vm552_vm9, %vm680_vm12  ;;  %vm809_vm9 = vcmask 195584  }
  0xca   : > { %v301_v5 = vpop.permute.xlu0 %300  ;;  %1684 = vset.pattern.permute.xlu1 %v1742_v8  ;;  %vm2007_vm8 = vmor %vm398_vm0, %vm526_vm15  ;;  %v744_v12 = vsel %vm712_vm1, 1.0, %v1744_v11  ;;  %vm682_vm15 = vcmp.eq.s32.totalorder %v1968_v62, %v1938_v46 }
  0xcb   : > { %vm393_vm2 = vcmp.eq.s32.totalorder %v1968_v62, %v301_v5  ;;  %363 = vperm.xlu1 %1684, %v1907_v33   ;;  %vm2013_vm12 = vmor %vm399_vm7, %vm527_vm3  ;;  %vm684_vm3 = vcmp.eq.s32.totalorder %v1968_v62, %v1931_v43 }
  0xcc   : > { %vm553_vm4 = vmor %vm393_vm2, %vm521_vm14  ;;  %v604_v6 = vpop.permute.xlu1 %603  ;;  %vm685_vm14 = vcmp.eq.s32.totalorder %v1968_v62, %v601_v1 }
  0xcd   : > { %vm713_vm6 = vmor %vm553_vm4, %vm681_vm11  ;;  %vm686_vm0 = vcmp.eq.s32.totalorder %v1968_v62, %v604_v6 }
  0xce   : > { %v304_v10 = vpop.permute.xlu0 %303  ;;  %v745_v13 = vsel %vm713_vm6, 1.0, %v1744_v11  ;;  %vm717_vm4 = vmor %vm1988_vm13, %vm685_vm14 }
  0xcf   : > { %vm394_vm11 = vcmp.eq.s32.totalorder %v1968_v62, %v304_v10  ;;  %366 = vperm.xlu1 %1684, %v1846_v17   ;;  %v776_v15 = vpack.c.bf16 %v745_v13, %v744_v12  ;;  %vm718_vm6 = vmor %vm2007_vm8, %vm686_vm0  ;;  %v749_v23 = vsel %vm717_vm4, 1.0, %v1744_v11 }
  0xd0   : > { %vm554_vm1 = vmor %vm394_vm11, %vm522_vm5  ;;  %vm524_vm5 = vcmp.eq.s32.totalorder %v1968_v62, %v1954_v54  ;;  %v750_v31 = vsel %vm718_vm6, 1.0, %v1744_v11 }
  0xd1   : > { %vm714_vm2 = vmor %vm554_vm1, %vm682_vm15  ;;  %1530 = vmatprep.mubr.msk.bf16.mxu0 %vm809_vm9, %v776_v15  ;;  %v322_v16 = vpop.permute.xlu1 %321  ;;  %vm689_vm15 = vcmp.eq.s32.totalorder %v1968_v62, %v1945_v49  ;;  %v289_v49 = vld [vmem:[%s1799_s28 + $0xd8] sm:$0xff] }
  0xd2   : > { %v746_v20 = vsel %vm714_vm2, 1.0, %v1744_v11  ;;  %v310_v21 = vpop.permute.xlu0 %309  ;;  %vm719_vm8 = vmor %vm2013_vm12, %vm687_vm10  ;;  %vm400_vm2 = vcmp.eq.s32.totalorder %v1968_v62, %v322_v16 }
  0xd3   : > { %v777_v22 = vpack.c.bf16 %v747_v19, %v746_v20  ;;  %vm396_vm7 = vcmp.eq.s32.totalorder %v1968_v62, %v310_v21  ;;  %1685 = vset.pattern.permute.xlu1 %v1741_v3 }
  0xd4   : > { %vm556_vm11 = vmor %vm396_vm7, %vm524_vm5  ;;  %494 = vperm.xlu1 %1685, %v1846_v17   ;;  %v751_v17 = vsel %vm719_vm8, 1.0, %v1744_v11 }
  0xd5   : > { %vm716_vm13 = vmor %vm556_vm11, %vm684_vm3  ;;  %1531 = vmatmul.mubr.msk.bf16.vlgmr.msra.gmra.mxu0 %vm809_vm9, %v777_v22  ;;  %v779_v35 = vpack.c.bf16 %v751_v17, %v750_v31 }
  0xd6   : > { %v748_v24 = vsel %vm716_vm13, 1.0, %v1744_v11  ;;  %v450_v25 = vpop.permute.xlu1 %449  ;;  %v325_v28 = vpop.permute.xlu0 %324 }
  0xd7   : > { %v778_v29 = vpack.c.bf16 %v749_v23, %v748_v24  ;;  %vm401_vm12 = vcmp.eq.s32.totalorder %v1968_v62, %v325_v28  ;;  %vm528_vm1 = vcmp.eq.s32.totalorder %v1968_v62, %v450_v25 }
  0xd8   : > { %1686 = vset.pattern.permute.xlu1 %v1743_v9  ;;  %vm560_vm4 = vmor %vm400_vm2, %vm528_vm1 }
  0xd9   : > { %648 = vperm.xlu1 %1686, %v1898_v30   ;;  %1534 = vmatprep.mubr.msk.bf16.mxu0 %vm809_vm9, %v778_v29 }
  0xda   : > { %v453_v32 = vpop.permute.xlu1 %452  ;;  %v328_v34 = vpop.permute.xlu0 %327 }
  0xdb   : > { %vm529_vm14 = vcmp.eq.s32.totalorder %v1968_v62, %v453_v32  ;;  %vm402_vm11 = vcmp.eq.s32.totalorder %v1968_v62, %v328_v34 }
  0xdc   : > { %vm561_vm0 = vmor %vm401_vm12, %vm529_vm14 }
  0xdd   : > { %651 = vperm.xlu1 %1686, %v1907_v33   ;;  %1535 = vmatmul.mubr.msk.bf16.gmra.mxu0 %vm809_vm9, %v779_v35  ;;  %vm721_vm3 = vmor %vm561_vm0, %vm689_vm15 }
  0xde   : > { %v2056_v36 = vpop.permute.xlu0 %333  ;;  %v753_v44 = vsel %vm721_vm3, 1.0, %v1744_v11 }
  0xdf   : > { %v331_v37 = vpop.permute.xlu1 %330  ;;  %vm404_vm2 = vcmp.eq.s32.totalorder %v1968_v62, %v2056_v36 }
  0xe0   : > { %vm403_vm13 = vcmp.eq.s32.totalorder %v1968_v62, %v331_v37 }
  0xe1   : > { %1687 = vset.pattern.permute.xlu1 %v1742_v8 }
  0xe2   : > { %369 = vperm.xlu1 %1687, %v286_v38   ;;  %v2060_v40 = vpop.permute.xlu0 %348 }
  0xe4   : > { %v459_v30 = vpop.permute.xlu1 %458 }
  0xe5   : > { %vm531_vm7 = vcmp.eq.s32.totalorder %v1968_v62, %v459_v30 }
  0xe6   : > { %1688 = vset.pattern.permute.xlu1 %v1741_v3  ;;  %v2067_v33 = vpop.permute.xlu0 %351  ;;  %vm563_vm8 = vmor %vm403_vm13, %vm531_vm7 }
  0xe7   : > { %497 = vperm.xlu1 %1688, %v286_v38  }
  0xe9   : > { %v610_v42 = vpop.permute.xlu1 %609 }
  0xea   : > { %vm688_vm5 = vcmp.eq.s32.totalorder %v1968_v62, %v610_v42  ;;  %v2072_v43 = vpop.permute.xlu0 %357 }
  0xeb   : > { %vm720_vm6 = vmor %vm560_vm4, %vm688_vm5  ;;  %500 = vperm.xlu1 %1688, %v1850_v18   ;;  %vm692_vm4 = vcmp.eq.s32.totalorder %v1968_v62, %v1948_v51 }
  0xec   : > { %v752_v45 = vsel %vm720_vm6, 1.0, %v1744_v11 }
  0xed   : > { %v780_v46 = vpack.c.bf16 %v753_v44, %v752_v45  ;;  %v616_v47 = vpop.permute.xlu1 %615 }
  0xee   : > { %v2078_v50 = vpop.permute.xlu0 %372  ;;  %vm690_vm15 = vcmp.eq.s32.totalorder %v1968_v62, %v616_v47 }
  0xef   : > { %1689 = vset.pattern.permute.xlu1 %v1742_v8  ;;  %1538 = vmatprep.mubr.msk.bf16.mxu0 %vm809_vm9, %v780_v46 }
  0xf0   : > { %378 = vperm.xlu1 %1689, %v289_v49  }
  0xf1   : > { %v619_v52 = vpop.permute.xlu1 %618 }
  0xf2   : > { %v2082_v54 = vpop.permute.xlu0 %375  ;;  %vm691_vm10 = vcmp.eq.s32.totalorder %v1968_v62, %v619_v52 }
  0xf3   : > { %vm723_vm12 = vmor %vm563_vm8, %vm691_vm10 }
  0xf4   : > { %1690 = vset.pattern.permute.xlu1 %v1741_v3  ;;  %v755_v0 = vsel %vm723_vm12, 1.0, %v1744_v11  ;;  %vm695_vm12 = vcmp.eq.s32.totalorder %v1968_v62, %v1951_v53 }
  0xf5   : > { %506 = vperm.xlu1 %1690, %v289_v49  }
  0xf6   : > { %v337_v18 = vpop.permute.xlu1 %336  ;;  %v2085_v57 = vpop.permute.xlu0 %381 }
  0xf7   : > { %vm405_vm10 = vcmp.eq.s32.totalorder %v1968_v62, %v337_v18 }
  0xf9   : > { %1691 = vset.pattern.permute.xlu1 %v1743_v9 }
  0xfa   : > { %657 = vperm.xlu1 %1691, %v286_v38  }
  0xfb   : > { %v456_v60 = vpop.permute.xlu0 %455  ;;  %v462_v63 = vpop.permute.xlu1 %461 }
  0xfc   : > { %vm530_vm14 = vcmp.eq.s32.totalorder %v1968_v62, %v456_v60  ;;  %vm532_vm3 = vcmp.eq.s32.totalorder %v1968_v62, %v462_v63 }
  0xfd   : > { %vm562_vm0 = vmor %vm402_vm11, %vm530_vm14 }
  0xfe   : > { %vm722_vm1 = vmor %vm562_vm0, %vm690_vm15  ;;  %663 = vperm.xlu1 %1691, %v1880_v26  }
  0xff   : > { %v754_v1 = vsel %vm722_vm1, 1.0, %v1744_v11  ;;  %v465_v6 = vpop.permute.xlu0 %464  ;;  %vm564_vm5 = vmor %vm404_vm2, %vm532_vm3 }
 0x100   : > { %v781_v2 = vpack.c.bf16 %v755_v0, %v754_v1  ;;  %v340_v4 = vpop.permute.xlu1 %339  ;;  %vm533_vm6 = vcmp.eq.s32.totalorder %v1968_v62, %v465_v6  ;;  %vm724_vm11 = vmor %vm564_vm5, %vm692_vm4 }
 0x101   : > { %vm565_vm13 = vmor %vm405_vm10, %vm533_vm6  ;;  %vm406_vm2 = vcmp.eq.s32.totalorder %v1968_v62, %v340_v4 }
 0x102   : > { %666 = vperm.xlu1 %1691, %v289_v49   ;;  %1539 = vmatmul.mubr.msk.bf16.gmra.mxu0 %vm809_vm9, %v781_v2 }
 0x103   : > { %v468_v7 = vpop.permute.xlu0 %467 }
 0x104   : > { %v343_v5 = vpop.permute.xlu1 %342  ;;  %vm534_vm0 = vcmp.eq.s32.totalorder %v1968_v62, %v468_v7 }
 0x105   : > { %vm407_vm8 = vcmp.eq.s32.totalorder %v1968_v62, %v343_v5  ;;  %vm566_vm4 = vmor %vm406_vm2, %vm534_vm0 }
 0x106   : > { %1694 = vset.pattern.permute.xlu1 %v1742_v8 }
 0x107   : > { %384 = vperm.xlu1 %1694, %v1920_v39  }
 0x109   : > { %v471_v26 = vpop.permute.xlu1 %470 }
 0x10a   : > { %vm535_vm7 = vcmp.eq.s32.totalorder %v1968_v62, %v471_v26 }
 0x10b   : > { %1695 = vset.pattern.permute.xlu1 %v1741_v3  ;;  %vm567_vm14 = vmor %vm407_vm8, %vm535_vm7  ;;  %vm409_vm7 = vcmp.eq.s32.totalorder %v1968_v62, %v2060_v40 }
 0x10c   : > { %509 = vperm.xlu1 %1695, %v1884_v27   ;;  %v756_v27 = vsel %vm724_vm11, 1.0, %v1744_v11  ;;  %vm727_vm3 = vmor %vm567_vm14, %vm695_vm12  ;;  %vm697_vm11 = vcmp.eq.s32.totalorder %v1968_v62, %v1956_v55 }
 0x10d   : > { %v759_v53 = vsel %vm727_vm3, 1.0, %v1744_v11 }
 0x10e   : > { %v625_v10 = vpop.permute.xlu1 %624 }
 0x10f   : > { %vm693_vm15 = vcmp.eq.s32.totalorder %v1968_v62, %v625_v10 }
 0x110   : > { %vm725_vm1 = vmor %vm565_vm13, %vm693_vm15  ;;  %1696 = vset.pattern.permute.xlu1 %v1742_v8 }
 0x111   : > { %v757_v51 = vsel %vm725_vm1, 1.0, %v1744_v11  ;;  %387 = vperm.xlu1 %1696, %v1927_v41   ;;  %vm410_vm1 = vcmp.eq.s32.totalorder %v1968_v62, %v2067_v33 }
 0x112   : > { %v782_v12 = vpack.c.bf16 %v757_v51, %v756_v27  ;;  %v628_v13 = vpop.permute.xlu1 %627 }
 0x113   : > { %vm694_vm5 = vcmp.eq.s32.totalorder %v1968_v62, %v628_v13 }
 0x114   : > { %vm726_vm6 = vmor %vm566_vm4, %vm694_vm5  ;;  %1542 = vmatprep.mubr.msk.bf16.mxu0 %vm809_vm9, %v782_v12  ;;  %v2208_v12 = vld [vmem:[%s2431_s5] ss:$0 sm:$0xff] }
 0x115   : > { %v758_v8 = vsel %vm726_vm6, 1.0, %v1744_v11  ;;  %390 = vperm.xlu1 %1696, %v1942_v48  }
 0x116   : > { %v783_v14 = vpack.c.bf16 %v759_v53, %v758_v8 }
 0x117   : > { %v346_v15 = vpop.permute.xlu1 %345 }
 0x118   : > { %1543 = vmatmul.mubr.msk.bf16.gmra.mxu0 %vm809_vm9, %v783_v14  ;;  %vm408_vm14 = vcmp.eq.s32.totalorder %v1968_v62, %v346_v15 }
 0x119   : > { %1697 = vset.pattern.permute.xlu1 %v1741_v3 }
 0x11a   : > { %518 = vperm.xlu1 %1697, %v1942_v48  }
 0x11c   : > { %v474_v16 = vpop.permute.xlu1 %473 }
 0x11d   : > { %vm536_vm12 = vcmp.eq.s32.totalorder %v1968_v62, %v474_v16 }
 0x11e   : > { %1699 = vset.pattern.permute.xlu1 %v1743_v9  ;;  %v480_v9 = vpop.permute.xlu0 %479  ;;  %vm568_vm15 = vmor %vm408_vm14, %vm536_vm12 }
 0x11f   : > { %672 = vperm.xlu1 %1699, %v1920_v39   ;;  %vm538_vm3 = vcmp.eq.s32.totalorder %v1968_v62, %v480_v9 }
 0x120   : > { %v477_v19 = vpop.permute.xlu1 %476  ;;  %vm570_vm4 = vmor %vm410_vm1, %vm538_vm3 }
 0x121   : > { %vm537_vm10 = vcmp.eq.s32.totalorder %v1968_v62, %v477_v19 }
 0x122   : > { %vm569_vm13 = vmor %vm409_vm7, %vm537_vm10  ;;  %v489_v34 = vpop.permute.xlu0 %488 }
 0x123   : > { %vm729_vm8 = vmor %vm569_vm13, %vm697_vm11  ;;  %675 = vperm.xlu1 %1699, %v1927_v41  }
 0x124   : > { %v761_v39 = vsel %vm729_vm8, 1.0, %v1744_v11  ;;  %vm412_vm8 = vcmp.eq.s32.totalorder %v1968_v62, %v2072_v43 }
 0x125   : > { %v355_v3 = vpop.permute.xlu1 %354 }
 0x126   : > { %vm411_vm7 = vcmp.eq.s32.totalorder %v1968_v62, %v355_v3 }
 0x12a   : > { %v483_v48 = vpop.permute.xlu1 %482 }
 0x12b   : > { %vm539_vm6 = vcmp.eq.s32.totalorder %v1968_v62, %v483_v48 }
 0x12c   : > { %vm571_vm11 = vmor %vm411_vm7, %vm539_vm6 }
 0x12f   : > { %v634_v20 = vpop.permute.xlu1 %633 }
 0x130   : > { %vm696_vm0 = vcmp.eq.s32.totalorder %v1968_v62, %v634_v20 }
 0x131   : > { %vm728_vm2 = vmor %vm568_vm15, %vm696_vm0  ;;  %vm700_vm15 = vcmp.eq.s32.totalorder %v1968_v62, %v1959_v56  ;;  %v492_v56 = vpop.permute.xlu0 %491 }
 0x132   : > { %v760_v41 = vsel %vm728_vm2, 1.0, %v1744_v11  ;;  %vm541_vm2 = vcmp.eq.s32.totalorder %v1968_v62, %v489_v34 }
 0x133   : > { %v784_v55 = vpack.c.bf16 %v761_v39, %v760_v41  ;;  %v640_v21 = vpop.permute.xlu1 %639 }
 0x134   : > { %vm698_vm5 = vcmp.eq.s32.totalorder %v1968_v62, %v640_v21 }
 0x135   : > { %1546 = vmatprep.mubr.msk.bf16.mxu0 %vm809_vm9, %v784_v55  ;;  %vm730_vm10 = vmor %vm570_vm4, %vm698_vm5  ;;  %v504_v52 = vpop.permute.xlu0 %503 }
 0x136   : > { %v762_v23 = vsel %vm730_vm10, 1.0, %v1744_v11 }
 0x137   : > { %v643_v22 = vpop.permute.xlu1 %642 }
 0x138   : > { %vm699_vm13 = vcmp.eq.s32.totalorder %v1968_v62, %v643_v22 }
 0x139   : > { %vm731_vm12 = vmor %vm571_vm11, %vm699_vm13  ;;  %vm542_vm11 = vcmp.eq.s32.totalorder %v1968_v62, %v492_v56  ;;  %v513_v5 = vpop.permute.xlu0 %512  ;;  %v1023_v56 = vld [vmem:[%s1804_s7] sm:$0x3] }
 0x13a   : > { %v763_v24 = vsel %vm731_vm12, 1.0, %v1744_v11 }
 0x13b   : > { %v785_v25 = vpack.c.bf16 %v763_v24, %v762_v23 }
 0x13c   : > { %v361_v28 = vpop.permute.xlu1 %360 }
 0x13d   : > { %1547 = vmatmul.mubr.msk.bf16.gmra.mxu0 %vm809_vm9, %v785_v25  ;;  %vm413_vm3 = vcmp.eq.s32.totalorder %v1968_v62, %v361_v28  ;;  %v516_v26 = vpop.permute.xlu0 %515 }
 0x13e   : > { %vm573_vm5 = vmor %vm413_vm3, %vm541_vm2 }
 0x141   : > { %v486_v29 = vpop.permute.xlu1 %485  ;;  %v670_v10 = vpop.permute.xlu0 %669 }
 0x142   : > { %vm540_vm14 = vcmp.eq.s32.totalorder %v1968_v62, %v486_v29 }
 0x143   : > { %vm572_vm0 = vmor %vm412_vm8, %vm540_vm14  ;;  %vm703_vm8 = vcmp.eq.s32.totalorder %v1968_v62, %v1961_v58 }
 0x144   : > { %vm2157_vm1 = vmor %vm572_vm0, %vm700_vm15 }
 0x145   : > { %v764_v37 = vsel %vm2157_vm1, 1.0, %v1744_v11  ;;  %vm417_vm1 = vcmp.eq.s32.totalorder %v1968_v62, %v2078_v50  ;;  %v679_v53 = vpop.permute.xlu0 %678 }
 0x146   : > { %v364_v17 = vpop.permute.xlu1 %363 }
 0x147   : > { %vm414_vm13 = vcmp.eq.s32.totalorder %v1968_v62, %v364_v17 }
 0x148   : > { %vm574_vm15 = vmor %vm414_vm13, %vm542_vm11 }
 0x14a   : > { %v367_v32 = vpop.permute.xlu1 %366 }
 0x14b   : > { %vm415_vm6 = vcmp.eq.s32.totalorder %v1968_v62, %v367_v32 }
 0x14f   : > { %v495_v35 = vpop.permute.xlu1 %494 }
 0x150   : > { %vm543_vm4 = vcmp.eq.s32.totalorder %v1968_v62, %v495_v35  ;;  %v1025_v35 = vshrl.u32 %v294_v59, 7 }
 0x151   : > { %vm575_vm7 = vmor %vm415_vm6, %vm543_vm4  ;;  %vm705_vm4 = vcmp.eq.s32.totalorder %v1968_v62, %v1965_v61 }
 0x152   : > { %vm735_vm14 = vmor %vm575_vm7, %vm703_vm8  ;;  %vm418_vm8 = vcmp.eq.s32.totalorder %v1968_v62, %v2082_v54 }
 0x153   : > { %v767_v33 = vsel %vm735_vm14, 1.0, %v1744_v11  ;;  %vm546_vm14 = vcmp.eq.s32.totalorder %v1968_v62, %v504_v52 }
 0x154   : > { %v649_v36 = vpop.permute.xlu1 %648 }
 0x155   : > { %vm701_vm10 = vcmp.eq.s32.totalorder %v1968_v62, %v649_v36  ;;  %v1033_v36 = vsub.s32 1, %v1025_v35 }
 0x156   : > { %vm733_vm12 = vmor %vm573_vm5, %vm701_vm10 }
 0x157   : > { %v765_v38 = vsel %vm733_vm12, 1.0, %v1744_v11 }
 0x158   : > { %v786_v40 = vpack.c.bf16 %v765_v38, %v764_v37  ;;  %v652_v30 = vpop.permute.xlu1 %651  ;;  %v1029_v37 = vsub.s32 0, %v1025_v35  ;;  %v1026_v38 = vadd.s32 8, %v1025_v35 }
 0x159   : > { %vm702_vm0 = vcmp.eq.s32.totalorder %v1968_v62, %v652_v30 }
 0x15a   : > { %vm734_vm2 = vmor %vm574_vm15, %vm702_vm0  ;;  %1550 = vmatprep.mubr.msk.bf16.mxu0 %vm809_vm9, %v786_v40  ;;  %v1034_v40 = vrot.slane %v1023_v56, %v1033_v36  ;;  %v1030_v30 = vrot.slane %v1023_v56, %v1029_v37 }
 0x15b   : > { %v766_v42 = vsel %vm734_vm2, 1.0, %v1744_v11  ;;  %vm578_vm2 = vmor %vm418_vm8, %vm546_vm14  ;;  %vm549_vm8 = vcmp.eq.s32.totalorder %v1968_v62, %v513_v5 }
 0x15c   : > { %v787_v58 = vpack.c.bf16 %v767_v33, %v766_v42  ;;  %v1745_v33 = vmov 1.0|1.0  }
 0x15d   : > { %v370_v43 = vpop.permute.xlu1 %369 }
 0x15e   : > { %1551 = vmatmul.mubr.msk.bf16.gmra.mxu0 %vm809_vm9, %v787_v58  ;;  %vm416_vm10 = vcmp.eq.s32.totalorder %v1968_v62, %v370_v43 }
 0x162   : > { %v498_v44 = vpop.permute.xlu1 %497 }
 0x163   : > { %vm544_vm7 = vcmp.eq.s32.totalorder %v1968_v62, %v498_v44 }
 0x164   : > { %vm576_vm11 = vmor %vm416_vm10, %vm544_vm7  ;;  %vm420_vm10 = vcmp.eq.s32.totalorder %v1968_v62, %v2085_v57 }
 0x166   : > { %v501_v45 = vpop.permute.xlu1 %500 }
 0x167   : > { %vm545_vm3 = vcmp.eq.s32.totalorder %v1968_v62, %v501_v45 }
 0x168   : > { %vm577_vm5 = vmor %vm417_vm1, %vm545_vm3 }
 0x169   : > { %vm737_vm6 = vmor %vm577_vm5, %vm705_vm4 }
 0x16a   : > { %v769_v50 = vsel %vm737_vm6, 1.0, %v1744_v11 }
 0x16b   : > { %v379_v46 = vpop.permute.xlu1 %378 }
 0x16c   : > { %vm419_vm1 = vcmp.eq.s32.totalorder %v1968_v62, %v379_v46 }
 0x170   : > { %v507_v47 = vpop.permute.xlu1 %506 }
 0x171   : > { %vm547_vm0 = vcmp.eq.s32.totalorder %v1968_v62, %v507_v47 }
 0x172   : > { %vm579_vm4 = vmor %vm419_vm1, %vm547_vm0 }
 0x175   : > { %v658_v49 = vpop.permute.xlu1 %657 }
 0x176   : > { %vm704_vm13 = vcmp.eq.s32.totalorder %v1968_v62, %v658_v49 }
 0x177   : > { %vm736_vm12 = vmor %vm576_vm11, %vm704_vm13 }
 0x178   : > { %v768_v18 = vsel %vm736_vm12, 1.0, %v1744_v11  ;;  %vm708_vm12 = vcmp.eq.s32.totalorder %v1968_v62, %v670_v10 }
 0x179   : > { %v788_v61 = vpack.c.bf16 %v769_v50, %v768_v18  ;;  %v664_v60 = vpop.permute.xlu1 %663 }
 0x17a   : > { %vm706_vm15 = vcmp.eq.s32.totalorder %v1968_v62, %v664_v60 }
 0x17b   : > { %1554 = vmatprep.mubr.msk.bf16.mxu0 %vm809_vm9, %v788_v61  ;;  %vm738_vm3 = vmor %vm578_vm2, %vm706_vm15 }
 0x17c   : > { %v770_v54 = vsel %vm738_vm3, 1.0, %v1744_v11  ;;  %vm711_vm3 = vcmp.eq.s32.totalorder %v1968_v62, %v679_v53 }
 0x17d   : > { %v667_v63 = vpop.permute.xlu1 %666 }
 0x17e   : > { %vm707_vm5 = vcmp.eq.s32.totalorder %v1968_v62, %v667_v63 }
 0x17f   : > { %vm739_vm6 = vmor %vm579_vm4, %vm707_vm5 }
 0x180   : > { %v771_v0 = vsel %vm739_vm6, 1.0, %v1744_v11 }
 0x181   : > { %v789_v1 = vpack.c.bf16 %v771_v0, %v770_v54 }
 0x182   : > { %v385_v2 = vpop.permute.xlu1 %384 }
 0x183   : > { %1555 = vmatmul.mubr.msk.bf16.gmra.mxu0 %vm809_vm9, %v789_v1  ;;  %vm421_vm11 = vcmp.eq.s32.totalorder %v1968_v62, %v385_v2 }
 0x184   : > { %vm581_vm15 = vmor %vm421_vm11, %vm549_vm8  ;;  %vm1036_vm8 = vcmp.eq.s32.totalorder %v1025_v35, %v1034_v40 }
 0x187   : > { %v510_v4 = vpop.permute.xlu1 %509 }
 0x188   : > { %vm548_vm7 = vcmp.eq.s32.totalorder %v1968_v62, %v510_v4 }
 0x189   : > { %vm580_vm13 = vmor %vm420_vm10, %vm548_vm7  ;;  %vm550_vm7 = vcmp.eq.s32.totalorder %v1968_v62, %v516_v26 }
 0x18a   : > { %vm740_vm0 = vmor %vm580_vm13, %vm708_vm12 }
 0x18b   : > { %v772_v9 = vsel %vm740_vm0, 1.0, %v1744_v11  ;;  %vm1035_vm0 = vcmp.eq.s32.totalorder %v1025_v35, %v1030_v30 }
 0x18c   : > { %v388_v6 = vpop.permute.xlu1 %387 }
 0x18d   : > { %vm422_vm5 = vcmp.eq.s32.totalorder %v1968_v62, %v388_v6 }
 0x18e   : > { %vm582_vm11 = vmor %vm422_vm5, %vm550_vm7 }
 0x190   : > { %v391_v7 = vpop.permute.xlu1 %390 }
 0x191   : > { %vm423_vm2 = vcmp.eq.s32.totalorder %v1968_v62, %v391_v7 }
 0x195   : > { %v1532_v27 = vpop.f32.mrf.mxu0  ;;  %v519_v51 = vpop.permute.xlu1 %518 }
 0x196   : > { %vm551_vm14 = vcmp.eq.s32.totalorder %v1968_v62, %v519_v51  ;;  %v2214_v57 = vadd.f32 %v1532_v27, %v2208_v12 }
 0x197   : > { %v896_v13 = vpop.f32.mrf.mxu0  ;;  %vm583_vm1 = vmor %vm423_vm2, %vm551_vm14  ;;  %vm1038_vm14 = vcmp.eq.s32.totalorder %v1026_v38, %v1034_v40  ;;  %vm1037_vm2 = vcmp.eq.s32.totalorder %v1026_v38, %v1030_v30 }
 0x198   : > { %v2223_v19 = vadd.f32 %v2208_v12, %v896_v13  ;;  %vm743_vm10 = vmor %vm583_vm1, %vm711_vm3 }
 0x199   : > { %v1533_v8 = vpop.f32.mrf.mxu0  ;;  %v775_v23 = vsel %vm743_vm10, 1.0, %v1744_v11 }
 0x19a   : > { %v2217_v14 = vadd.f32 %v1533_v8, %v2208_v12  ;;  %v673_v15 = vpop.permute.xlu1 %672 }
 0x19b   : > { %vm709_vm4 = vcmp.eq.s32.totalorder %v1968_v62, %v673_v15  ;;  %v899_v16 = vpop.f32.mrf.mxu0 }
 0x19c   : > { %v1048_v3 = vpack.c.bf16 %v2217_v14, %v2214_v57  ;;  %vm741_vm6 = vmor %vm581_vm15, %vm709_vm4  ;;  %v2228_v48 = vadd.f32 %v2208_v12, %v899_v16 }
 0x19d   : > { %v773_v20 = vsel %vm741_vm6, 1.0, %v1744_v11  ;;  %v1536_v39 = vpop.f32.mrf.mxu0  ;;  %vm1436_vm15 = vmpackc.low %vm1038_vm14, %vm1036_vm8 }
 0x19e   : > { %v790_v41 = vpack.c.bf16 %v773_v20, %v772_v9  ;;  %v1047_v55 = vpack.c.bf16 %v2228_v48, %v2223_v19  ;;  %v676_v21 = vpop.permute.xlu1 %675  ;;  %v2240_v28 = vadd.f32 %v1536_v39, %v2208_v12  ;;  %1437 = vmatprep.mubr.msk.bf16.mxu1 %vm1436_vm15, %v1745_v33 }
 0x19f   : > { %vm710_vm13 = vcmp.eq.s32.totalorder %v1968_v62, %v676_v21  ;;  %v912_v22 = vpop.f32.mrf.mxu0 }
 0x1a0   : > { %vm742_vm12 = vmor %vm582_vm11, %vm710_vm13  ;;  %1558 = vmatprep.mubr.msk.bf16.mxu0 %vm809_vm9, %v790_v41  ;;  %v2246_v62 = vadd.f32 %v2208_v12, %v912_v22 }
 0x1a1   : > { %v774_v24 = vsel %vm742_vm12, 1.0, %v1744_v11  ;;  %v1537_v25 = vpop.f32.mrf.mxu0 }
 0x1a2   : > { %v791_v29 = vpack.c.bf16 %v775_v23, %v774_v24  ;;  %v2243_v31 = vadd.f32 %v1537_v25, %v2208_v12 }
 0x1a3   : > { %v915_v17 = vpop.f32.mrf.mxu0 }
 0x1a4   : > { %v1050_v32 = vpack.c.bf16 %v2243_v31, %v2240_v28  ;;  %v2251_v34 = vadd.f32 %v2208_v12, %v915_v17  ;;  %1559 = vmatmul.mubr.msk.bf16.gmra.mxu0 %vm809_vm9, %v791_v29  ;;  %vm2259_vm9 = vmpackc.low %vm1037_vm2, %vm1035_vm0  ;;  %v1045_v31 = vld [vmem:[#allocation2] sm:$0xff] }
 0x1a6   : > { %v1049_v11 = vpack.c.bf16 %v2251_v34, %v2246_v62 }
 0x1c2   : > { %v1540_v58 = vpop.f32.mrf.mxu0 }
 0x1c3   : > { %v937_v17 = vadd.f32 %v1540_v58, %v2208_v12 }
 0x1c4   : > { %v928_v59 = vpop.f32.mrf.mxu0 }
 0x1c5   : > { %v929_v40 = vadd.f32 %v2208_v12, %v928_v59 }
 0x1c6   : > { %v1541_v43 = vpop.f32.mrf.mxu0 }
 0x1c7   : > { %v940_v23 = vadd.f32 %v1541_v43, %v2208_v12 }
 0x1c8   : > { %v931_v44 = vpop.f32.mrf.mxu0 }
 0x1c9   : > { %v1052_v36 = vpack.c.bf16 %v940_v23, %v937_v17  ;;  %v932_v56 = vadd.f32 %v2208_v12, %v931_v44 }
 0x1cb   : > { %v1051_v43 = vpack.c.bf16 %v932_v56, %v929_v40 }
 0x1d8   : > { %v1544_v45 = vpop.f32.mrf.mxu0 }
 0x1d9   : > { %v953_v13 = vadd.f32 %v1544_v45, %v2208_v12 }
 0x1da   : > { %v944_v46 = vpop.f32.mrf.mxu0 }
 0x1db   : > { %v945_v21 = vadd.f32 %v2208_v12, %v944_v46 }
 0x1dc   : > { %v1545_v47 = vpop.f32.mrf.mxu0 }
 0x1dd   : > { %v956_v7 = vadd.f32 %v1545_v47, %v2208_v12 }
 0x1de   : > { %v947_v49 = vpop.f32.mrf.mxu0 }
 0x1df   : > { %v948_v9 = vadd.f32 %v2208_v12, %v947_v49  ;;  %v1054_v20 = vpack.c.bf16 %v956_v7, %v953_v13 }
 0x1e1   : > { %v1053_v24 = vpack.c.bf16 %v948_v9, %v945_v21 }
 0x1fd   : > { %v1548_v52 = vpop.f32.mrf.mxu0 }
 0x1fe   : > { %v969_v59 = vadd.f32 %v1548_v52, %v2208_v12 }
 0x1ff   : > { %v960_v50 = vpop.f32.mrf.mxu0 }
 0x201   : > { %v1549_v18 = vpop.f32.mrf.mxu0 }
 0x202   : > { %v972_v47 = vadd.f32 %v1549_v18, %v2208_v12 }
 0x203   : > { %v963_v61 = vpop.f32.mrf.mxu0 }
 0x204   : > { %v1056_v49 = vpack.c.bf16 %v972_v47, %v969_v59 }
 0x21e   : > { %v1552_v60 = vpop.f32.mrf.mxu0 }
 0x21f   : > { %v985_v30 = vadd.f32 %v1552_v60, %v2208_v12  ;;  %v964_v60 = vadd.f32 %v2208_v12, %v963_v61 }
 0x220   : > { %v976_v63 = vpop.f32.mrf.mxu0 }
 0x221   : > { %v977_v46 = vadd.f32 %v2208_v12, %v976_v63  ;;  %v961_v63 = vadd.f32 %v2208_v12, %v960_v50 }
 0x222   : > { %v1553_v54 = vpop.f32.mrf.mxu0 }
 0x223   : > { %v988_v37 = vadd.f32 %v1553_v54, %v2208_v12  ;;  %v1055_v54 = vpack.c.bf16 %v964_v60, %v961_v63 }
 0x224   : > { %v979_v0 = vpop.f32.mrf.mxu0 }
 0x225   : > { %v1058_v45 = vpack.c.bf16 %v988_v37, %v985_v30  ;;  %v980_v58 = vadd.f32 %v2208_v12, %v979_v0 }
 0x227   : > { %v1057_v44 = vpack.c.bf16 %v980_v58, %v977_v46 }
 0x243   : > { %v1556_v1 = vpop.f32.mrf.mxu0 }
 0x244   : > { %v1001_v22 = vadd.f32 %v1556_v1, %v2208_v12 }
 0x245   : > { %v992_v2 = vpop.f32.mrf.mxu0 }
 0x246   : > { %v993_v35 = vadd.f32 %v2208_v12, %v992_v2 }
 0x247   : > { %v1557_v4 = vpop.f32.mrf.mxu0 }
 0x248   : > { %v1004_v39 = vadd.f32 %v1557_v4, %v2208_v12 }
 0x249   : > { %v995_v5 = vpop.f32.mrf.mxu0 }
 0x24a   : > { %v1060_v25 = vpack.c.bf16 %v1004_v39, %v1001_v22  ;;  %v996_v29 = vadd.f32 %v2208_v12, %v995_v5 }
 0x24c   : > { %v1059_v38 = vpack.c.bf16 %v996_v29, %v993_v35 }
 0x264   : > { %v1560_v6 = vpop.f32.mrf.mxu0 }
 0x265   : > { %v1017_v27 = vadd.f32 %v1560_v6, %v2208_v12 }
 0x266   : > { %v1008_v26 = vpop.f32.mrf.mxu0 }
 0x267   : > { %v1009_v8 = vadd.f32 %v2208_v12, %v1008_v26 }
 0x268   : > { %v1561_v10 = vpop.f32.mrf.mxu0 }
 0x269   : > { %v1020_v51 = vadd.f32 %v1561_v10, %v2208_v12 }
 0x26a   : > { %v1011_v53 = vpop.f32.mrf.mxu0 }
 0x26b   : > { %v1012_v15 = vadd.f32 %v2208_v12, %v1011_v53  ;;  %v1062_v16 = vpack.c.bf16 %v1020_v51, %v1017_v27 }
 0x26d   : > { %v1061_v41 = vpack.c.bf16 %v1012_v15, %v1009_v8  ;;  %1468 = vmatprep.subr.bf16.mxu1 %v1062_v16 }
 0x26e   : > { %1469 = vmatpush3.bf16.msra.mxu1 %v1054_v20 }
 0x26f   : > { %1470 = vmatprep.subr.bf16.mxu1 %v1061_v41 }
 0x272   : > { %1471 = vmatpush3.bf16.msra.mxu1 %v1053_v24 }
 0x273   : > { %1472 = vmatprep.subr.bf16.mxu1 %v1060_v25 }
 0x276   : > { %1473 = vmatpush3.bf16.msra.mxu1 %v1052_v36 }
 0x277   : > { %1474 = vmatprep.subr.bf16.mxu1 %v1059_v38 }
 0x27a   : > { %1475 = vmatpush3.bf16.msra.mxu1 %v1051_v43 }
 0x27b   : > { %1476 = vmatprep.subr.bf16.mxu1 %v1058_v45 }
 0x27e   : > { %1477 = vmatpush3.bf16.msra.mxu1 %v1050_v32 }
 0x27f   : > { %1478 = vmatprep.subr.bf16.mxu1 %v1057_v44 }
 0x282   : > { %1479 = vmatpush3.bf16.msra.mxu1 %v1049_v11  ;;  %v1046_v11 = vld [vmem:[#allocation2 + $0x8] sm:$0xff] }
 0x283   : > { %1480 = vmatprep.subr.bf16.mxu1 %v1056_v49 }
 0x286   : > { %1481 = vmatpush3.bf16.msra.mxu1 %v1048_v3 }
 0x287   : > { %1482 = vmatprep.subr.bf16.mxu1 %v1055_v54 }
 0x28a   : > { %1483 = vmatpush3.bf16.msra.mxu1 %v1047_v55 }
 0x28d   : > { %1439 = vmatmul.mubr.msk.bf16.vlgmr.msra.gmra.mxu1 %vm2259_vm9, %v1745_v33 }
 0x34d   : > { %v1484_v28 = vpop.f32.mrf.mxu1 }
 0x34f   : > { %v1485_v62 = vpop.f32.mrf.mxu1 }
 0x350   : > { %v1486_v32 = vadd.f32 %v1485_v62, %v1484_v28 }
 0x351   : > { %v1487_v12 = vpop.f32.mrf.mxu1 }
 0x352   : > { %v1104_v34 = vadd.f32 %v1486_v32, %v1045_v31 }
 0x353   : > { %v1488_v52 = vpop.f32.mrf.mxu1 }
 0x354   : > { %1106 = vst [vmem:[#allocation2] sm:$0xff] %v1104_v34  ;;  %v1489_v57 = vadd.f32 %v1488_v52, %v1487_v12  ;;  %1111 = sbr.rel (%p1440_p5) target bundleno = 1346 (0x542), region = 52 }
 0x356   : > { %v1105_v14 = vadd.f32 %v1489_v57, %v1046_v11 }
 0x358   : > { %1107 = vst [vmem:[#allocation2 + $0x8] sm:$0xff] %v1105_v14 }
 0x359   : > { %v1133_v19 = vld [vmem:[%s2429_s3 + $0x78] sm:$0xff]  ;;  %v1132_v3 = vld [vmem:[%s2429_s3 + $0x70] sm:$0xff]  ;;  %v1131_v48 = vld [vmem:[%s2429_s3 + $0x68] sm:$0xff] }
 0x35a   : > { %1562 = vmatprep.subr.mxu0 %v1133_v19  ;;  %v1130_v55 = vld [vmem:[%s2429_s3 + $0x60] sm:$0xff]  ;;  %v1129_v42 = vld [vmem:[%s2429_s3 + $0x58] sm:$0xff]  ;;  %v1229_v18 = vld [vmem:[%s2430_s4 + $0x70] sm:$0xff] }
 0x35b   : > { %1563 = vmatpush3.msra.mxu0 %v1133_v19  ;;  %v1112_v33 = vld [vmem:[#allocation2] sm:$0xff]  ;;  %v1230_v50 = vld [vmem:[%s2430_s4 + $0x78] sm:$0xff]  ;;  %v1128_v61 = vld [vmem:[%s2429_s3 + $0x50] sm:$0xff] }
 0x35c   : > { %1564 = vmatprep.subr.mxu0 %v1132_v3  ;;  %1594 = vmatprep.mubr.f32.mxu0 %v1112_v33  ;;  %v1228_v0 = vld [vmem:[%s2430_s4 + $0x68] sm:$0xff]  ;;  %v1227_v2 = vld [vmem:[%s2430_s4 + $0x60] sm:$0xff]  ;;  %v1226_v5 = vld [vmem:[%s2430_s4 + $0x58] sm:$0xff] }
 0x35d   : > { %1565 = vmatpush3.msra.mxu0 %v1132_v3  ;;  %1597 = vmatprep.subr.mxu1 %v1230_v50  ;;  %v1127_v1 = vld [vmem:[%s2429_s3 + $0x48] sm:$0xff]  ;;  %v1126_v4 = vld [vmem:[%s2429_s3 + $0x40] sm:$0xff]  ;;  %v1125_v6 = vld [vmem:[%s2429_s3 + $0x38] sm:$0xff] }
 0x35e   : > { %1566 = vmatprep.subr.mxu0 %v1131_v48  ;;  %1598 = vmatpush3.msra.mxu1 %v1230_v50  ;;  %v1225_v26 = vld [vmem:[%s2430_s4 + $0x50] sm:$0xff]  ;;  %v1224_v10 = vld [vmem:[%s2430_s4 + $0x48] sm:$0xff]  ;;  %v1223_v51 = vld [vmem:[%s2430_s4 + $0x40] sm:$0xff] }
 0x35f   : > { %1567 = vmatpush3.msra.mxu0 %v1131_v48  ;;  %1599 = vmatprep.subr.mxu1 %v1229_v18  ;;  %v1124_v7 = vld [vmem:[%s2429_s3 + $0x30] sm:$0xff]  ;;  %v1123_v27 = vld [vmem:[%s2429_s3 + $0x28] sm:$0xff]  ;;  %v1122_v13 = vld [vmem:[%s2429_s3 + $0x20] sm:$0xff] }
 0x360   : > { %1568 = vmatprep.subr.mxu0 %v1130_v55  ;;  %1600 = vmatpush3.msra.mxu1 %v1229_v18  ;;  %v1222_v53 = vld [vmem:[%s2430_s4 + $0x38] sm:$0xff]  ;;  %v1221_v15 = vld [vmem:[%s2430_s4 + $0x30] sm:$0xff]  ;;  %v1220_v9 = vld [vmem:[%s2430_s4 + $0x28] sm:$0xff] }
 0x361   : > { %1569 = vmatpush3.msra.mxu0 %v1130_v55  ;;  %1601 = vmatprep.subr.mxu1 %v1228_v0  ;;  %v1121_v8 = vld [vmem:[%s2429_s3 + $0x18] sm:$0xff]  ;;  %v1120_v16 = vld [vmem:[%s2429_s3 + $0x10] sm:$0xff]  ;;  %v1119_v20 = vld [vmem:[%s2429_s3 + $0x8] sm:$0xff] }
 0x362   : > { %1570 = vmatprep.subr.mxu0 %v1129_v42  ;;  %1602 = vmatpush3.msra.mxu1 %v1228_v0  ;;  %v1219_v39 = vld [vmem:[%s2430_s4 + $0x20] sm:$0xff]  ;;  %v1113_v21 = vld [vmem:[#allocation2 + $0x8] sm:$0xff]  ;;  %v1218_v22 = vld [vmem:[%s2430_s4 + $0x18] sm:$0xff] }
 0x363   : > { %1571 = vmatpush3.msra.mxu0 %v1129_v42  ;;  %1603 = vmatprep.subr.mxu1 %v1227_v2  ;;  %v1118_v41 = vld [vmem:[%s2429_s3] sm:$0xff]  ;;  %v1217_v23 = vld [vmem:[%s2430_s4 + $0x10] sm:$0xff]  ;;  %v1216_v24 = vld [vmem:[%s2430_s4 + $0x8] sm:$0xff] }
 0x364   : > { %1572 = vmatprep.subr.mxu0 %v1128_v61  ;;  %1604 = vmatpush3.msra.mxu1 %v1227_v2  ;;  %v1215_v25 = vld [vmem:[%s2430_s4] sm:$0xff] }
 0x365   : > { %1573 = vmatpush3.msra.mxu0 %v1128_v61  ;;  %1605 = vmatprep.subr.mxu1 %v1226_v5  ;;  %v1441_v29 = vld [vmem:[%s2431_s5 + $0x1] ss:$0 sm:$0xff]  ;;  %v1442_v30 = vld [vmem:[%s2431_s5 + $0x2] ss:$0 sm:$0xff]  ;;  %v1443_v33 = vld [vmem:[%s2431_s5 + $0x3] ss:$0 sm:$0xff] }
 0x366   : > { %1574 = vmatprep.subr.mxu0 %v1127_v1  ;;  %1606 = vmatpush3.msra.mxu1 %v1226_v5  ;;  %v1444_v18 = vld [vmem:[%s2431_s5 + $0x4] ss:$0 sm:$0xff] }
 0x367   : > { %1575 = vmatpush3.msra.mxu0 %v1127_v1  ;;  %1607 = vmatprep.subr.mxu1 %v1225_v26 }
 0x368   : > { %1576 = vmatprep.subr.mxu0 %v1126_v4  ;;  %1608 = vmatpush3.msra.mxu1 %v1225_v26 }
 0x369   : > { %1577 = vmatpush3.msra.mxu0 %v1126_v4  ;;  %1609 = vmatprep.subr.mxu1 %v1224_v10 }
 0x36a   : > { %1578 = vmatprep.subr.mxu0 %v1125_v6  ;;  %1610 = vmatpush3.msra.mxu1 %v1224_v10 }
 0x36b   : > { %1579 = vmatpush3.msra.mxu0 %v1125_v6  ;;  %1611 = vmatprep.subr.mxu1 %v1223_v51 }
 0x36c   : > { %1580 = vmatprep.subr.mxu0 %v1124_v7  ;;  %1612 = vmatpush3.msra.mxu1 %v1223_v51 }
 0x36d   : > { %1581 = vmatpush3.msra.mxu0 %v1124_v7  ;;  %1613 = vmatprep.subr.mxu1 %v1222_v53 }
 0x36e   : > { %1582 = vmatprep.subr.mxu0 %v1123_v27  ;;  %1614 = vmatpush3.msra.mxu1 %v1222_v53 }
 0x36f   : > { %1583 = vmatpush3.msra.mxu0 %v1123_v27  ;;  %1615 = vmatprep.subr.mxu1 %v1221_v15 }
 0x370   : > { %1584 = vmatprep.subr.mxu0 %v1122_v13  ;;  %1616 = vmatpush3.msra.mxu1 %v1221_v15 }
 0x371   : > { %1585 = vmatpush3.msra.mxu0 %v1122_v13  ;;  %1617 = vmatprep.subr.mxu1 %v1220_v9 }
 0x372   : > { %1586 = vmatprep.subr.mxu0 %v1121_v8  ;;  %1618 = vmatpush3.msra.mxu1 %v1220_v9 }
 0x373   : > { %1587 = vmatpush3.msra.mxu0 %v1121_v8  ;;  %1619 = vmatprep.subr.mxu1 %v1219_v39 }
 0x374   : > { %1588 = vmatprep.subr.mxu0 %v1120_v16  ;;  %1620 = vmatpush3.msra.mxu1 %v1219_v39 }
 0x375   : > { %1589 = vmatpush3.msra.mxu0 %v1120_v16  ;;  %1621 = vmatprep.subr.mxu1 %v1218_v22 }
 0x376   : > { %1590 = vmatprep.subr.mxu0 %v1119_v20  ;;  %1622 = vmatpush3.msra.mxu1 %v1218_v22 }
 0x377   : > { %1591 = vmatpush3.msra.mxu0 %v1119_v20  ;;  %1623 = vmatprep.subr.mxu1 %v1217_v23 }
 0x378   : > { %1592 = vmatprep.subr.mxu0 %v1118_v41  ;;  %1624 = vmatpush3.msra.mxu1 %v1217_v23 }
 0x379   : > { %1593 = vmatpush3.msra.mxu0 %v1118_v41  ;;  %1625 = vmatprep.subr.mxu1 %v1216_v24 }
 0x37a   : > { %1595 = vmatmul.mubr.f32.vlgmr.msra.gmra.mxu0 %v1113_v21  ;;  %1626 = vmatpush3.msra.mxu1 %v1216_v24 }
 0x37b   : > { %1627 = vmatprep.subr.mxu1 %v1215_v25 }
 0x37c   : > { %1628 = vmatpush3.msra.mxu1 %v1215_v25 }
 0x43a   : > { %v1596_v17 = vpop.f32.mrf.mxu0 }
 0x43b   : > { %v1210_v35 = vadd.f32 %v1596_v17, %v1441_v29 }
 0x43c   : > { %v1204_v36 = vpop.f32.mrf.mxu0 }
 0x43d   : > { %v1205_v56 = vadd.f32 %v1441_v29, %v1204_v36  ;;  %v1214_v38 = vmax.f32 %v1210_v35, 0.0 }
 0x43f   : > { %v1213_v37 = vmax.f32 %v1205_v56, 0.0 }
 0x441   : > { %1629 = vmatprep.mubr.f32.mxu1 %v1213_v37 }
 0x442   : > { %1630 = vmatmul.mubr.f32.vlgmr.msra.gmra.mxu1 %v1214_v38 }
 0x502   : > { %v1631_v40 = vpop.f32.mrf.mxu1 }
 0x503   : > { %v1307_v45 = vadd.f32 %v1631_v40, %v1442_v30 }
 0x504   : > { %v1301_v43 = vpop.f32.mrf.mxu1 }
 0x505   : > { %v1302_v58 = vadd.f32 %v1442_v30, %v1301_v43 }
 0x507   : > { %v1310_v46 = vadd.f32 %v1307_v45, %v1302_v58 }
 0x509   : > { %v1311_v47 = vrot.slane %v1310_v46, 4 }
 0x50b   : > { %v1312_v44 = vadd.f32 %v1311_v47, %v1310_v46 }
 0x50d   : > { %v1313_v59 = vrot.slane %v1312_v44, 2 }
 0x50f   : > { %v1314_v49 = vadd.f32 %v1313_v59, %v1312_v44 }
 0x511   : > { %v1315_v60 = vrot.slane %v1314_v49, 1 }
 0x513   : > { %v1316_v63 = vadd.f32 %v1315_v60, %v1314_v49 }
 0x515   : > { %v1318_v54 = vmul.f32 0.0625, %v1316_v63 }
 0x517   : > { %v1319_v28 = vsub.f32 %v1302_v58, %v1318_v54  ;;  %v1320_v31 = vsub.f32 %v1307_v45, %v1318_v54 }
 0x519   : > { %v1321_v62 = vmul.f32 %v1319_v28, %v1319_v28  ;;  %v1322_v32 = vmul.f32 %v1320_v31, %v1320_v31 }
 0x51b   : > { %v1323_v12 = vadd.f32 %v1322_v32, %v1321_v62 }
 0x51d   : > { %v1324_v34 = vrot.slane %v1323_v12, 4 }
 0x51f   : > { %v1325_v11 = vadd.f32 %v1324_v34, %v1323_v12 }
 0x521   : > { %v1326_v52 = vrot.slane %v1325_v11, 2 }
 0x523   : > { %v1327_v57 = vadd.f32 %v1326_v52, %v1325_v11 }
 0x525   : > { %v1328_v14 = vrot.slane %v1327_v57, 1 }
 0x527   : > { %v1329_v19 = vadd.f32 %v1328_v14, %v1327_v57 }
 0x529   : > { %v1330_v3 = vmul.f32 0.0625, %v1329_v19 }
 0x52b   : > { %v1331_v48 = vadd.f32 1e-05, %v1330_v3 }
 0x52d   : > { %1702 = vrsqrt.f32 %v1331_v48 }
 0x53a   : > { %v1703_v55 = vpop.eup %1702 }
 0x53b   : > { %v1333_v42 = vmul.f32 %v1703_v55, %v1319_v28  ;;  %v1334_v50 = vmul.f32 %v1703_v55, %v1320_v31 }
 0x53d   : > { %v1339_v61 = vmul.f32 %v1443_v33, %v1333_v42  ;;  %v1340_v0 = vmul.f32 %v1443_v33, %v1334_v50 }
 0x53f   : > { %v1345_v1 = vadd.f32 %v1444_v18, %v1339_v61  ;;  %v1346_v2 = vadd.f32 %v1444_v18, %v1340_v0 }
 0x541   : > { %1347 = vst [vmem:[#allocation2] sm:$0xff] %v1345_v1  ;;  %1348 = vst [vmem:[#allocation2 + $0x8] sm:$0xff] %v1346_v2 }
 0x542 PF: > { %p1637_p6 = scmp.eq.s32.totalorder %s1790_s22, 1  ;;  %s1746_s20 = smov [#allocation2]  }
 0x543   : > { %s1355_s23 = sshll.u32 %s1746_s20, 4  ;;  %s1356_s23 = int_to_ptr.vmem [resolvable:$true] %s1355_s23 }
 0x544   : > { %s1704_s24 = scalar_lea.vmem %s1356_s23, 256  ;;  %p1711_p10 = scmp.lt.s32.totalorder %s1356_s23, %s1356_s23 }
 0x545   : > { %p1705_p7 = scmp.ne.s32.totalorder %s1356_s23, %s1704_s24  ;;  %p1712_p11 = scmp.lt.s32.totalorder %s1704_s24, %s1704_s24 }
 0x547   : > { %p1706_p8 = pnand %p1705_p7, %p1637_p6  ;;  %p1713_p12 = por %p1712_p11, %p1711_p10 }
 0x549   : > { %p1707_p9 = pneg %p1706_p8 }
 0x54b   : > { %p1714_p13 = pnand %p1713_p12, %p1707_p9 }
 0x54d   : > { %1717 = shalt.err (!%p1714_p13)
}
 0x54e   : > { %s1747_s25 = smov 128   ;;  %s1748_s26 = smov 8  }
 0x54f   : > { %1634 = dma.vmem_to_hbm [thread:$0]  (%p1637_p6), %s1356_s23, 256, %s2432_s6, [#allocation3], %s1747_s25, %s1747_s25, %s1748_s26  }
 0x550   : > { %1733 = dma.done.wait (%p1637_p6), [#allocation3], 256  }
 0x551   : > { %1735 = vsyncadd (%p1637_p6), [#allocation3], 4294967040 }
 0x552 PF: > { %s17_s21 = sadd.s32 1, %s1738_s21  }
 0x553   : > { %p14_p0 = scmp.ge.s32.totalorder %s17_s21, 4  }
 0x555   :  { %16 = sbr.rel (!%p14_p0) target bundleno = 1 (0x1), region = 82 }
 0x55a   :  { %1371 = vsyncpa [#allocation3], 1 }
 0x55b   :  { %1373 = vsyncpa [#allocation3 + $0x1], 1 }

</bundles_post_ra>
